<compile_context>
chip_gen: v7x
topology: tpu7x:2x2x1
jax: 0.10.0
libtpu: 0.0.40
codegen_flags: <defaults>
</compile_context>

<pallas_src>
import functools

import jax
import jax.numpy as jnp
from jax import lax
from jax.experimental import pallas as pl
from jax.experimental.pallas import tpu as pltpu


# ----------------------------- Fused model kernel -----------------------------

def make_model_kernel(T, B, H, num_layers, unroll=2):
    """Builds a kernel computing the full MultiResidualBiGRU forward pass.

    Ref layout (positional):
      inputs : x (T,B,D_in) time-major,
               per layer i: wi (D_i,6H), bi (1,6H), whf (H,3H), bhf (1,3H),
                            whb (H,3H), bhb (1,3H),
               fc_wT (2H,O), fc_b (1,O)
      outputs: out (B,O)
      scratch: xproj (T,B,6H), fwd (T,B,H), bwd (T,B,H)
    Gate order inside every 3H block is (r, z, n); the 6H input block is
    [forward gates | backward gates].
    """

    def kernel(*refs):
        x_ref = refs[0]
        pos = 1
        layer_refs = []
        for _ in range(num_layers):
            layer_refs.append(refs[pos:pos + 6])
            pos += 6
        fc_w_ref, fc_b_ref = refs[pos], refs[pos + 1]
        pos += 2
        out_ref = refs[pos]
        xproj_ref, fwd_ref, bwd_ref = refs[pos + 1], refs[pos + 2], refs[pos + 3]

        # h0 = zeros(2, B, H) in the PyTorch forward.
        h_f = jnp.zeros((B, H), jnp.float32)
        h_b = jnp.zeros((B, H), jnp.float32)

        for i in range(num_layers):
            wi_ref, bi_ref, whf_ref, bhf_ref, whb_ref, bhb_ref = layer_refs[i]

            # Hoist weight loads / bias broadcasts out of the recurrence.
            bi = jnp.broadcast_to(bi_ref[...], (B, 6 * H))
            bhf = jnp.broadcast_to(bhf_ref[...], (B, 3 * H))
            bhb = jnp.broadcast_to(bhb_ref[...], (B, 3 * H))
            whf = whf_ref[...]
            whb = whb_ref[...]

            # ---- input projection (x-independent of h): hoisted out of the
            #      serial recurrence.  Static-t loop; for large T*B this would
            #      become one flattened (T*B, D) x (D, 6H) matmul.
            if i == 0:
                wi = wi_ref[...]                               # (D_in, 6H)
                for t in range(T):
                    xproj_ref[t] = (
                        jnp.dot(x_ref[t], wi,
                                preferred_element_type=jnp.float32) + bi)
            else:
                wi = wi_ref[...]                               # (2H, 6H)
                wi_fwd_rows = wi[:H, :]     # rows multiplying the fwd half
                wi_bwd_rows = wi[H:, :]     # rows multiplying the bwd half
                for t in range(T):
                    # Previous layer's output is kept as two (T,B,H) buffers;
                    # splitting W_i's rows avoids any concatenation.
                    xproj_ref[t] = (
                        jnp.dot(fwd_ref[t], wi_fwd_rows,
                                preferred_element_type=jnp.float32)
                        + jnp.dot(bwd_ref[t], wi_bwd_rows,
                                  preferred_element_type=jnp.float32)
                        + bi)

            double = (i != 0)   # residual: out = out + Identity(out) = 2*out

            def one_step(t, hf, hb):
                tb = T - 1 - t
                xp_f = xproj_ref[t]      # (B, 6H); fwd gates in lanes [0, 3H)
                xp_b = xproj_ref[tb]     # (B, 6H); bwd gates in lanes [3H, 6H)
                hp_f = jnp.dot(hf, whf,
                               preferred_element_type=jnp.float32) + bhf
                hp_b = jnp.dot(hb, whb,
                               preferred_element_type=jnp.float32) + bhb

                r_f = jax.nn.sigmoid(xp_f[:, 0:H] + hp_f[:, 0:H])
                z_f = jax.nn.sigmoid(xp_f[:, H:2 * H] + hp_f[:, H:2 * H])
                n_f = jnp.tanh(xp_f[:, 2 * H:3 * H] + r_f * hp_f[:, 2 * H:3 * H])
                hf_new = (1.0 - z_f) * n_f + z_f * hf

                r_b = jax.nn.sigmoid(xp_b[:, 3 * H:4 * H] + hp_b[:, 0:H])
                z_b = jax.nn.sigmoid(xp_b[:, 4 * H:5 * H] + hp_b[:, H:2 * H])
                n_b = jnp.tanh(xp_b[:, 5 * H:6 * H] + r_b * hp_b[:, 2 * H:3 * H])
                hb_new = (1.0 - z_b) * n_b + z_b * hb

                # Residual doubling applies to the layer OUTPUT only (not to
                # the hidden state chained into the next layer).
                fwd_ref[t] = (hf_new + hf_new) if double else hf_new
                bwd_ref[tb] = (hb_new + hb_new) if double else hb_new
                return hf_new, hb_new

            # ---- both-direction recurrence, manually unrolled by `unroll`.
            n_main = (T // unroll) * unroll

            def body(s, carry):
                hf, hb = carry
                for u in range(unroll):
                    hf, hb = one_step(s * unroll + u, hf, hb)
                return hf, hb

            if n_main > 0:
                h_f, h_b = lax.fori_loop(0, T // unroll, body, (h_f, h_b))
            for t in range(n_main, T):        # static tail (only if T % unroll)
                h_f, h_b = one_step(t, h_f, h_b)
            # h_f / h_b now hold this layer's final hidden states -> chained
            # as h0 into the next layer (PyTorch h0 = h_n of previous GRU).

        # ---- final fc on the last timestep of the last layer's output.
        last_f = fwd_ref[T - 1]                # (B, H), already residual-scaled
        last_b = bwd_ref[T - 1]                # (B, H)
        fc_w = fc_w_ref[...]                   # (2H, O)
        out_ref[...] = (
            jnp.dot(last_f, fc_w[:H, :], preferred_element_type=jnp.float32)
            + jnp.dot(last_b, fc_w[H:, :], preferred_element_type=jnp.float32)
            + fc_b_ref[...])

    return kernel


# ----------------------------- Wrapper -----------------------------

def multi_residual_bigru(x, params, *, hidden_dim, num_layers):
    """x: (B, T, input_dim) batch-first float32 -> (B, output_dim)."""
    B, T, _ = x.shape
    H = hidden_dim
    O = params['fc_wT'].shape[1]

    x_tm = jnp.transpose(x, (1, 0, 2))   # single transpose to time-major

    args = [x_tm]
    for i in range(num_layers):
        lp = params['gru'][i]
        args += [lp['wi'], lp['bi'], lp['whf'], lp['bhf'], lp['whb'], lp['bhb']]
    args += [params['fc_wT'], params['fc_b']]

    vmem = pl.BlockSpec(memory_space=pltpu.MemorySpace.VMEM)
    kernel = make_model_kernel(T, B, H, num_layers)

    return pl.pallas_call(
        kernel,
        out_shape=jax.ShapeDtypeStruct((B, O), jnp.float32),
        in_specs=[vmem] * len(args),
        out_specs=vmem,
        scratch_shapes=[
            pltpu.VMEM((T, B, 6 * H), jnp.float32),   # fused input projections
            pltpu.VMEM((T, B, H), jnp.float32),       # forward outputs (time-major)
            pltpu.VMEM((T, B, H), jnp.float32),       # backward outputs (time-major)
        ],
    )(*args)


# ----------------------------- Parameter init -----------------------------

def init_layer_params(key, d_in, h):
    """Fused-gate params: wi (d_in, 6h) = [fwd r|z|n | bwd r|z|n], etc."""
    k = 1.0 / jnp.sqrt(jnp.float32(h))
    keys = jax.random.split(key, 8)
    u = lambda kk, shape: jax.random.uniform(kk, shape, jnp.float32, -k, k)
    wi_f = u(keys[0], (d_in, 3 * h))
    wi_b = u(keys[1], (d_in, 3 * h))
    bi_f = u(keys[2], (1, 3 * h))
    bi_b = u(keys[3], (1, 3 * h))
    return dict(
        wi=jnp.concatenate([wi_f, wi_b], axis=1),    # (d_in, 6h)
        bi=jnp.concatenate([bi_f, bi_b], axis=1),    # (1, 6h)
        whf=u(keys[4], (h, 3 * h)), bhf=u(keys[5], (1, 3 * h)),
        whb=u(keys[6], (h, 3 * h)), bhb=u(keys[7], (1, 3 * h)),
    )


def init_params(key, input_dim, hidden_dim, num_layers, output_dim):
    params = {'gru': []}
    for i in range(num_layers):
        d_in = input_dim if i == 0 else hidden_dim * 2
        key, kl = jax.random.split(key)
        params['gru'].append(init_layer_params(kl, d_in, hidden_dim))
    # residuals[0] (nn.Linear) exists in __init__ but is never used in
    # forward(); residuals[i>0] are Identity -> no parameters needed.
    key, kw, kb = jax.random.split(key, 3)
    kf = 1.0 / jnp.sqrt(jnp.float32(hidden_dim * 2))
    params['fc_wT'] = jax.random.uniform(kw, (hidden_dim * 2, output_dim),
                                         jnp.float32, -kf, kf)
    params['fc_b'] = jax.random.uniform(kb, (1, output_dim),
                                        jnp.float32, -kf, kf)
    return params


# ----------------------------- Pure-JAX reference -----------------------------

def _gru_dir_ref(x_tm, h0, wi, wh, bi, bh, H):
    hp = lax.Precision.HIGHEST

    def step(h, x_t):
        gx = jnp.dot(x_t, wi, precision=hp) + bi
        gh = jnp.dot(h, wh, precision=hp) + bh
        r = jax.nn.sigmoid(gx[:, :H] + gh[:, :H])
        z = jax.nn.sigmoid(gx[:, H:2 * H] + gh[:, H:2 * H])
        n = jnp.tanh(gx[:, 2 * H:] + r * gh[:, 2 * H:])
        h_new = (1.0 - z) * n + z * h
        return h_new, h_new

    hT, outs = lax.scan(step, h0, x_tm)
    return outs, hT


def model_ref(x, params, *, hidden_dim, num_layers):
    B = x.shape[0]
    H = hidden_dim
    h0f = jnp.zeros((B, H), jnp.float32)
    h0b = jnp.zeros((B, H), jnp.float32)
    out = x
    for i in range(num_layers):
        lp = params['gru'][i]
        wif, wib = lp['wi'][:, :3 * H], lp['wi'][:, 3 * H:]
        bif, bib = lp['bi'][:, :3 * H], lp['bi'][:, 3 * H:]
        x_tm = jnp.transpose(out, (1, 0, 2))
        out_f, hTf = _gru_dir_ref(x_tm, h0f, wif, lp['whf'], bif, lp['bhf'], H)
        out_b_rev, hTb = _gru_dir_ref(x_tm[::-1], h0b, wib, lp['whb'], bib,
                                      lp['bhb'], H)
        out = jnp.transpose(
            jnp.concatenate([out_f, out_b_rev[::-1]], axis=-1), (1, 0, 2))
        h0f, h0b = hTf, hTb
        if i != 0:
            out = out + out
    last = out[:, -1, :]
    return (jnp.dot(last, params['fc_wT'], precision=lax.Precision.HIGHEST)
            + params['fc_b'])


# ----------------------------- Main -----------------------------

if __name__ == "__main__":
    INPUT_DIM, HIDDEN_DIM, NUM_LAYERS, OUTPUT_DIM = 8, 32, 2, 4
    B, T = 2, 8

    key = jax.random.PRNGKey(0)
    key, kx, kp = jax.random.split(key, 3)
    x = jax.random.normal(kx, (B, T, INPUT_DIM), jnp.float32)
    params = init_params(kp, INPUT_DIM, HIDDEN_DIM, NUM_LAYERS, OUTPUT_DIM)

    fwd = jax.jit(functools.partial(multi_residual_bigru,
                                    hidden_dim=HIDDEN_DIM,
                                    num_layers=NUM_LAYERS))
    out = jax.block_until_ready(fwd(x, params))

    ref = model_ref(x, params, hidden_dim=HIDDEN_DIM, num_layers=NUM_LAYERS)
    assert out.shape == (B, OUTPUT_DIM)
    assert jnp.allclose(out, ref, rtol=1e-4, atol=1e-4), \
        f"max abs err {jnp.max(jnp.abs(out - ref))}"

    print("KERNEL_OK")
</pallas_src>

<mosaic_0001>
module attributes {stable_mosaic.version = 11 : i64} {
  func.func @kernel(%arg0: memref<8x2x8xf32, #tpu.memory_space<vmem>>, %arg1: memref<8x192xf32, #tpu.memory_space<vmem>>, %arg2: memref<1x192xf32, #tpu.memory_space<vmem>>, %arg3: memref<32x96xf32, #tpu.memory_space<vmem>>, %arg4: memref<1x96xf32, #tpu.memory_space<vmem>>, %arg5: memref<32x96xf32, #tpu.memory_space<vmem>>, %arg6: memref<1x96xf32, #tpu.memory_space<vmem>>, %arg7: memref<64x192xf32, #tpu.memory_space<vmem>>, %arg8: memref<1x192xf32, #tpu.memory_space<vmem>>, %arg9: memref<32x96xf32, #tpu.memory_space<vmem>>, %arg10: memref<1x96xf32, #tpu.memory_space<vmem>>, %arg11: memref<32x96xf32, #tpu.memory_space<vmem>>, %arg12: memref<1x96xf32, #tpu.memory_space<vmem>>, %arg13: memref<64x4xf32, #tpu.memory_space<vmem>>, %arg14: memref<1x4xf32, #tpu.memory_space<vmem>>, %arg15: memref<2x4xf32, #tpu.memory_space<vmem>>, %arg16: memref<8x2x192xf32, #tpu.memory_space<vmem>>, %arg17: memref<8x2x32xf32, #tpu.memory_space<vmem>>, %arg18: memref<8x2x32xf32, #tpu.memory_space<vmem>>) attributes {dimension_semantics = [], scalar_prefetch = 0 : i64, scratch_operands = 3 : i64, tpu.core_type = #tpu.core_type<tc>} {
    %cst = arith.constant 0.000000e+00 : f32
    %0 = vector.broadcast %cst : f32 to vector<2x32xf32>
    %cst_0 = arith.constant 0.000000e+00 : f32
    %1 = vector.broadcast %cst_0 : f32 to vector<2x32xf32>
    %c0 = arith.constant 0 : index
    %c0_1 = arith.constant 0 : index
    %2 = vector.load %arg2[%c0, %c0_1] : memref<1x192xf32, #tpu.memory_space<vmem>>, vector<1x192xf32>
    %3 = vector.shape_cast %2 : vector<1x192xf32> to vector<1x192xf32>
    %4 = vector.broadcast %3 : vector<1x192xf32> to vector<2x192xf32>
    %c0_2 = arith.constant 0 : index
    %c0_3 = arith.constant 0 : index
    %5 = vector.load %arg4[%c0_2, %c0_3] : memref<1x96xf32, #tpu.memory_space<vmem>>, vector<1x96xf32>
    %6 = vector.shape_cast %5 : vector<1x96xf32> to vector<1x96xf32>
    %7 = vector.broadcast %6 : vector<1x96xf32> to vector<2x96xf32>
    %c0_4 = arith.constant 0 : index
    %c0_5 = arith.constant 0 : index
    %8 = vector.load %arg6[%c0_4, %c0_5] : memref<1x96xf32, #tpu.memory_space<vmem>>, vector<1x96xf32>
    %9 = vector.shape_cast %8 : vector<1x96xf32> to vector<1x96xf32>
    %10 = vector.broadcast %9 : vector<1x96xf32> to vector<2x96xf32>
    %c0_6 = arith.constant 0 : index
    %c0_7 = arith.constant 0 : index
    %11 = vector.load %arg3[%c0_6, %c0_7] : memref<32x96xf32, #tpu.memory_space<vmem>>, vector<32x96xf32>
    %c0_8 = arith.constant 0 : index
    %c0_9 = arith.constant 0 : index
    %12 = vector.load %arg5[%c0_8, %c0_9] : memref<32x96xf32, #tpu.memory_space<vmem>>, vector<32x96xf32>
    %c0_10 = arith.constant 0 : index
    %c0_11 = arith.constant 0 : index
    %13 = vector.load %arg1[%c0_10, %c0_11] : memref<8x192xf32, #tpu.memory_space<vmem>>, vector<8x192xf32>
    %c0_12 = arith.constant 0 : index
    %c0_13 = arith.constant 0 : index
    %c0_14 = arith.constant 0 : index
    %14 = vector.load %arg0[%c0_12, %c0_13, %c0_14] : memref<8x2x8xf32, #tpu.memory_space<vmem>>, vector<1x2x8xf32>
    %15 = vector.shape_cast %14 : vector<1x2x8xf32> to vector<2x8xf32>
    %cst_15 = arith.constant dense<0.000000e+00> : vector<2x192xf32>
    %16 = tpu.matmul %15, %13, %cst_15 {dimension_numbers = #tpu.dot_dimension_numbers<[1], [0], [0], [1], [0, 0, 1, 1], [], []>} : vector<2x8xf32>, vector<8x192xf32>, vector<2x192xf32> -> vector<2x192xf32>
    %17 = arith.addf %16, %4 : vector<2x192xf32>
    %c0_16 = arith.constant 0 : index
    %c0_17 = arith.constant 0 : index
    %c0_18 = arith.constant 0 : index
    %18 = vector.load %arg16[%c0_16, %c0_17, %c0_18] : memref<8x2x192xf32, #tpu.memory_space<vmem>>, vector<1x2x192xf32>
    %19 = vector.shape_cast %18 : vector<1x2x192xf32> to vector<2x192xf32>
    %20 = vector.shape_cast %17 : vector<2x192xf32> to vector<1x2x192xf32>
    tpu.vector_store %arg16[%c0_16, %c0_17, %c0_18], %20 {strides = array<i32>} : memref<8x2x192xf32, #tpu.memory_space<vmem>>, vector<1x2x192xf32>,
    %c1 = arith.constant 1 : index
    %c0_19 = arith.constant 0 : index
    %c0_20 = arith.constant 0 : index
    %21 = vector.load %arg0[%c1, %c0_19, %c0_20] : memref<8x2x8xf32, #tpu.memory_space<vmem>>, vector<1x2x8xf32>
    %22 = vector.shape_cast %21 : vector<1x2x8xf32> to vector<2x8xf32>
    %cst_21 = arith.constant dense<0.000000e+00> : vector<2x192xf32>
    %23 = tpu.matmul %22, %13, %cst_21 {dimension_numbers = #tpu.dot_dimension_numbers<[1], [0], [0], [1], [0, 0, 1, 1], [], []>} : vector<2x8xf32>, vector<8x192xf32>, vector<2x192xf32> -> vector<2x192xf32>
    %24 = arith.addf %23, %4 : vector<2x192xf32>
    %c1_22 = arith.constant 1 : index
    %c0_23 = arith.constant 0 : index
    %c0_24 = arith.constant 0 : index
    %25 = vector.load %arg16[%c1_22, %c0_23, %c0_24] : memref<8x2x192xf32, #tpu.memory_space<vmem>>, vector<1x2x192xf32>
    %26 = vector.shape_cast %25 : vector<1x2x192xf32> to vector<2x192xf32>
    %27 = vector.shape_cast %24 : vector<2x192xf32> to vector<1x2x192xf32>
    tpu.vector_store %arg16[%c1_22, %c0_23, %c0_24], %27 {strides = array<i32>} : memref<8x2x192xf32, #tpu.memory_space<vmem>>, vector<1x2x192xf32>,
    %c2 = arith.constant 2 : index
    %c0_25 = arith.constant 0 : index
    %c0_26 = arith.constant 0 : index
    %28 = vector.load %arg0[%c2, %c0_25, %c0_26] : memref<8x2x8xf32, #tpu.memory_space<vmem>>, vector<1x2x8xf32>
    %29 = vector.shape_cast %28 : vector<1x2x8xf32> to vector<2x8xf32>
    %cst_27 = arith.constant dense<0.000000e+00> : vector<2x192xf32>
    %30 = tpu.matmul %29, %13, %cst_27 {dimension_numbers = #tpu.dot_dimension_numbers<[1], [0], [0], [1], [0, 0, 1, 1], [], []>} : vector<2x8xf32>, vector<8x192xf32>, vector<2x192xf32> -> vector<2x192xf32>
    %31 = arith.addf %30, %4 : vector<2x192xf32>
    %c2_28 = arith.constant 2 : index
    %c0_29 = arith.constant 0 : index
    %c0_30 = arith.constant 0 : index
    %32 = vector.load %arg16[%c2_28, %c0_29, %c0_30] : memref<8x2x192xf32, #tpu.memory_space<vmem>>, vector<1x2x192xf32>
    %33 = vector.shape_cast %32 : vector<1x2x192xf32> to vector<2x192xf32>
    %34 = vector.shape_cast %31 : vector<2x192xf32> to vector<1x2x192xf32>
    tpu.vector_store %arg16[%c2_28, %c0_29, %c0_30], %34 {strides = array<i32>} : memref<8x2x192xf32, #tpu.memory_space<vmem>>, vector<1x2x192xf32>,
    %c3 = arith.constant 3 : index
    %c0_31 = arith.constant 0 : index
    %c0_32 = arith.constant 0 : index
    %35 = vector.load %arg0[%c3, %c0_31, %c0_32] : memref<8x2x8xf32, #tpu.memory_space<vmem>>, vector<1x2x8xf32>
    %36 = vector.shape_cast %35 : vector<1x2x8xf32> to vector<2x8xf32>
    %cst_33 = arith.constant dense<0.000000e+00> : vector<2x192xf32>
    %37 = tpu.matmul %36, %13, %cst_33 {dimension_numbers = #tpu.dot_dimension_numbers<[1], [0], [0], [1], [0, 0, 1, 1], [], []>} : vector<2x8xf32>, vector<8x192xf32>, vector<2x192xf32> -> vector<2x192xf32>
    %38 = arith.addf %37, %4 : vector<2x192xf32>
    %c3_34 = arith.constant 3 : index
    %c0_35 = arith.constant 0 : index
    %c0_36 = arith.constant 0 : index
    %39 = vector.load %arg16[%c3_34, %c0_35, %c0_36] : memref<8x2x192xf32, #tpu.memory_space<vmem>>, vector<1x2x192xf32>
    %40 = vector.shape_cast %39 : vector<1x2x192xf32> to vector<2x192xf32>
    %41 = vector.shape_cast %38 : vector<2x192xf32> to vector<1x2x192xf32>
    tpu.vector_store %arg16[%c3_34, %c0_35, %c0_36], %41 {strides = array<i32>} : memref<8x2x192xf32, #tpu.memory_space<vmem>>, vector<1x2x192xf32>,
    %c4 = arith.constant 4 : index
    %c0_37 = arith.constant 0 : index
    %c0_38 = arith.constant 0 : index
    %42 = vector.load %arg0[%c4, %c0_37, %c0_38] : memref<8x2x8xf32, #tpu.memory_space<vmem>>, vector<1x2x8xf32>
    %43 = vector.shape_cast %42 : vector<1x2x8xf32> to vector<2x8xf32>
    %cst_39 = arith.constant dense<0.000000e+00> : vector<2x192xf32>
    %44 = tpu.matmul %43, %13, %cst_39 {dimension_numbers = #tpu.dot_dimension_numbers<[1], [0], [0], [1], [0, 0, 1, 1], [], []>} : vector<2x8xf32>, vector<8x192xf32>, vector<2x192xf32> -> vector<2x192xf32>
    %45 = arith.addf %44, %4 : vector<2x192xf32>
    %c4_40 = arith.constant 4 : index
    %c0_41 = arith.constant 0 : index
    %c0_42 = arith.constant 0 : index
    %46 = vector.load %arg16[%c4_40, %c0_41, %c0_42] : memref<8x2x192xf32, #tpu.memory_space<vmem>>, vector<1x2x192xf32>
    %47 = vector.shape_cast %46 : vector<1x2x192xf32> to vector<2x192xf32>
    %48 = vector.shape_cast %45 : vector<2x192xf32> to vector<1x2x192xf32>
    tpu.vector_store %arg16[%c4_40, %c0_41, %c0_42], %48 {strides = array<i32>} : memref<8x2x192xf32, #tpu.memory_space<vmem>>, vector<1x2x192xf32>,
    %c5 = arith.constant 5 : index
    %c0_43 = arith.constant 0 : index
    %c0_44 = arith.constant 0 : index
    %49 = vector.load %arg0[%c5, %c0_43, %c0_44] : memref<8x2x8xf32, #tpu.memory_space<vmem>>, vector<1x2x8xf32>
    %50 = vector.shape_cast %49 : vector<1x2x8xf32> to vector<2x8xf32>
    %cst_45 = arith.constant dense<0.000000e+00> : vector<2x192xf32>
    %51 = tpu.matmul %50, %13, %cst_45 {dimension_numbers = #tpu.dot_dimension_numbers<[1], [0], [0], [1], [0, 0, 1, 1], [], []>} : vector<2x8xf32>, vector<8x192xf32>, vector<2x192xf32> -> vector<2x192xf32>
    %52 = arith.addf %51, %4 : vector<2x192xf32>
    %c5_46 = arith.constant 5 : index
    %c0_47 = arith.constant 0 : index
    %c0_48 = arith.constant 0 : index
    %53 = vector.load %arg16[%c5_46, %c0_47, %c0_48] : memref<8x2x192xf32, #tpu.memory_space<vmem>>, vector<1x2x192xf32>
    %54 = vector.shape_cast %53 : vector<1x2x192xf32> to vector<2x192xf32>
    %55 = vector.shape_cast %52 : vector<2x192xf32> to vector<1x2x192xf32>
    tpu.vector_store %arg16[%c5_46, %c0_47, %c0_48], %55 {strides = array<i32>} : memref<8x2x192xf32, #tpu.memory_space<vmem>>, vector<1x2x192xf32>,
    %c6 = arith.constant 6 : index
    %c0_49 = arith.constant 0 : index
    %c0_50 = arith.constant 0 : index
    %56 = vector.load %arg0[%c6, %c0_49, %c0_50] : memref<8x2x8xf32, #tpu.memory_space<vmem>>, vector<1x2x8xf32>
    %57 = vector.shape_cast %56 : vector<1x2x8xf32> to vector<2x8xf32>
    %cst_51 = arith.constant dense<0.000000e+00> : vector<2x192xf32>
    %58 = tpu.matmul %57, %13, %cst_51 {dimension_numbers = #tpu.dot_dimension_numbers<[1], [0], [0], [1], [0, 0, 1, 1], [], []>} : vector<2x8xf32>, vector<8x192xf32>, vector<2x192xf32> -> vector<2x192xf32>
    %59 = arith.addf %58, %4 : vector<2x192xf32>
    %c6_52 = arith.constant 6 : index
    %c0_53 = arith.constant 0 : index
    %c0_54 = arith.constant 0 : index
    %60 = vector.load %arg16[%c6_52, %c0_53, %c0_54] : memref<8x2x192xf32, #tpu.memory_space<vmem>>, vector<1x2x192xf32>
    %61 = vector.shape_cast %60 : vector<1x2x192xf32> to vector<2x192xf32>
    %62 = vector.shape_cast %59 : vector<2x192xf32> to vector<1x2x192xf32>
    tpu.vector_store %arg16[%c6_52, %c0_53, %c0_54], %62 {strides = array<i32>} : memref<8x2x192xf32, #tpu.memory_space<vmem>>, vector<1x2x192xf32>,
    %c7 = arith.constant 7 : index
    %c0_55 = arith.constant 0 : index
    %c0_56 = arith.constant 0 : index
    %63 = vector.load %arg0[%c7, %c0_55, %c0_56] : memref<8x2x8xf32, #tpu.memory_space<vmem>>, vector<1x2x8xf32>
    %64 = vector.shape_cast %63 : vector<1x2x8xf32> to vector<2x8xf32>
    %cst_57 = arith.constant dense<0.000000e+00> : vector<2x192xf32>
    %65 = tpu.matmul %64, %13, %cst_57 {dimension_numbers = #tpu.dot_dimension_numbers<[1], [0], [0], [1], [0, 0, 1, 1], [], []>} : vector<2x8xf32>, vector<8x192xf32>, vector<2x192xf32> -> vector<2x192xf32>
    %66 = arith.addf %65, %4 : vector<2x192xf32>
    %c7_58 = arith.constant 7 : index
    %c0_59 = arith.constant 0 : index
    %c0_60 = arith.constant 0 : index
    %67 = vector.load %arg16[%c7_58, %c0_59, %c0_60] : memref<8x2x192xf32, #tpu.memory_space<vmem>>, vector<1x2x192xf32>
    %68 = vector.shape_cast %67 : vector<1x2x192xf32> to vector<2x192xf32>
    %69 = vector.shape_cast %66 : vector<2x192xf32> to vector<1x2x192xf32>
    tpu.vector_store %arg16[%c7_58, %c0_59, %c0_60], %69 {strides = array<i32>} : memref<8x2x192xf32, #tpu.memory_space<vmem>>, vector<1x2x192xf32>,
    %c0_i32 = arith.constant 0 : i32
    %c4_i32 = arith.constant 4 : i32
    %70 = arith.addi %c0_i32, %c4_i32 : i32
    %c1_i32 = arith.constant 1 : i32
    %71:2 = scf.for %arg19 = %c0_i32 to %70 step %c1_i32 iter_args(%arg20 = %0, %arg21 = %1) -> (vector<2x32xf32>, vector<2x32xf32>)  : i32 {
      %c2_i32 = arith.constant 2 : i32
      %190 = arith.muli %arg19, %c2_i32 : i32
      %c0_i32_180 = arith.constant 0 : i32
      %191 = arith.addi %190, %c0_i32_180 : i32
      %c7_i32 = arith.constant 7 : i32
      %192 = arith.subi %c7_i32, %191 : i32
      %193 = arith.index_cast %191 : i32 to index
      %c0_181 = arith.constant 0 : index
      %c0_182 = arith.constant 0 : index
      %194 = vector.load %arg16[%193, %c0_181, %c0_182] : memref<8x2x192xf32, #tpu.memory_space<vmem>>, vector<1x2x192xf32>
      %195 = vector.shape_cast %194 : vector<1x2x192xf32> to vector<2x192xf32>
      %196 = arith.index_cast %192 : i32 to index
      %c0_183 = arith.constant 0 : index
      %c0_184 = arith.constant 0 : index
      %197 = vector.load %arg16[%196, %c0_183, %c0_184] : memref<8x2x192xf32, #tpu.memory_space<vmem>>, vector<1x2x192xf32>
      %198 = vector.shape_cast %197 : vector<1x2x192xf32> to vector<2x192xf32>
      %cst_185 = arith.constant dense<0.000000e+00> : vector<2x96xf32>
      %199 = tpu.matmul %arg20, %11, %cst_185 {dimension_numbers = #tpu.dot_dimension_numbers<[1], [0], [0], [1], [0, 0, 1, 1], [], []>} : vector<2x32xf32>, vector<32x96xf32>, vector<2x96xf32> -> vector<2x96xf32>
      %200 = arith.addf %199, %7 : vector<2x96xf32>
      %cst_186 = arith.constant dense<0.000000e+00> : vector<2x96xf32>
      %201 = tpu.matmul %arg21, %12, %cst_186 {dimension_numbers = #tpu.dot_dimension_numbers<[1], [0], [0], [1], [0, 0, 1, 1], [], []>} : vector<2x32xf32>, vector<32x96xf32>, vector<2x96xf32> -> vector<2x96xf32>
      %202 = arith.addf %201, %10 : vector<2x96xf32>
      %203 = vector.extract_strided_slice %195 {offsets = [0, 0], sizes = [2, 32], strides = [1, 1]} : vector<2x192xf32> to vector<2x32xf32>
      %204 = vector.extract_strided_slice %200 {offsets = [0, 0], sizes = [2, 32], strides = [1, 1]} : vector<2x96xf32> to vector<2x32xf32>
      %205 = arith.addf %203, %204 : vector<2x32xf32>
      %206 = arith.negf %205 : vector<2x32xf32>
      %207 = math.exp %206 : vector<2x32xf32>
      %cst_187 = arith.constant 1.000000e+00 : f32
      %208 = vector.broadcast %cst_187 : f32 to vector<2x32xf32>
      %209 = arith.addf %208, %207 : vector<2x32xf32>
      %210 = arith.divf %208, %209 : vector<2x32xf32>
      %211 = vector.extract_strided_slice %195 {offsets = [0, 32], sizes = [2, 32], strides = [1, 1]} : vector<2x192xf32> to vector<2x32xf32>
      %212 = vector.extract_strided_slice %200 {offsets = [0, 32], sizes = [2, 32], strides = [1, 1]} : vector<2x96xf32> to vector<2x32xf32>
      %213 = arith.addf %211, %212 : vector<2x32xf32>
      %214 = arith.negf %213 : vector<2x32xf32>
      %215 = math.exp %214 : vector<2x32xf32>
      %cst_188 = arith.constant 1.000000e+00 : f32
      %216 = vector.broadcast %cst_188 : f32 to vector<2x32xf32>
      %217 = arith.addf %216, %215 : vector<2x32xf32>
      %218 = arith.divf %216, %217 : vector<2x32xf32>
      %219 = vector.extract_strided_slice %195 {offsets = [0, 64], sizes = [2, 32], strides = [1, 1]} : vector<2x192xf32> to vector<2x32xf32>
      %220 = vector.extract_strided_slice %200 {offsets = [0, 64], sizes = [2, 32], strides = [1, 1]} : vector<2x96xf32> to vector<2x32xf32>
      %221 = arith.mulf %210, %220 : vector<2x32xf32>
      %222 = arith.addf %219, %221 : vector<2x32xf32>
      %223 = math.tanh %222 : vector<2x32xf32>
      %cst_189 = arith.constant 1.000000e+00 : f32
      %224 = vector.broadcast %cst_189 : f32 to vector<2x32xf32>
      %225 = arith.subf %224, %218 : vector<2x32xf32>
      %226 = arith.mulf %225, %223 : vector<2x32xf32>
      %227 = arith.mulf %218, %arg20 : vector<2x32xf32>
      %228 = arith.addf %226, %227 : vector<2x32xf32>
      %229 = vector.extract_strided_slice %198 {offsets = [0, 96], sizes = [2, 32], strides = [1, 1]} : vector<2x192xf32> to vector<2x32xf32>
      %230 = vector.extract_strided_slice %202 {offsets = [0, 0], sizes = [2, 32], strides = [1, 1]} : vector<2x96xf32> to vector<2x32xf32>
      %231 = arith.addf %229, %230 : vector<2x32xf32>
      %232 = arith.negf %231 : vector<2x32xf32>
      %233 = math.exp %232 : vector<2x32xf32>
      %cst_190 = arith.constant 1.000000e+00 : f32
      %234 = vector.broadcast %cst_190 : f32 to vector<2x32xf32>
      %235 = arith.addf %234, %233 : vector<2x32xf32>
      %236 = arith.divf %234, %235 : vector<2x32xf32>
      %237 = vector.extract_strided_slice %198 {offsets = [0, 128], sizes = [2, 32], strides = [1, 1]} : vector<2x192xf32> to vector<2x32xf32>
      %238 = vector.extract_strided_slice %202 {offsets = [0, 32], sizes = [2, 32], strides = [1, 1]} : vector<2x96xf32> to vector<2x32xf32>
      %239 = arith.addf %237, %238 : vector<2x32xf32>
      %240 = arith.negf %239 : vector<2x32xf32>
      %241 = math.exp %240 : vector<2x32xf32>
      %cst_191 = arith.constant 1.000000e+00 : f32
      %242 = vector.broadcast %cst_191 : f32 to vector<2x32xf32>
      %243 = arith.addf %242, %241 : vector<2x32xf32>
      %244 = arith.divf %242, %243 : vector<2x32xf32>
      %245 = vector.extract_strided_slice %198 {offsets = [0, 160], sizes = [2, 32], strides = [1, 1]} : vector<2x192xf32> to vector<2x32xf32>
      %246 = vector.extract_strided_slice %202 {offsets = [0, 64], sizes = [2, 32], strides = [1, 1]} : vector<2x96xf32> to vector<2x32xf32>
      %247 = arith.mulf %236, %246 : vector<2x32xf32>
      %248 = arith.addf %245, %247 : vector<2x32xf32>
      %249 = math.tanh %248 : vector<2x32xf32>
      %cst_192 = arith.constant 1.000000e+00 : f32
      %250 = vector.broadcast %cst_192 : f32 to vector<2x32xf32>
      %251 = arith.subf %250, %244 : vector<2x32xf32>
      %252 = arith.mulf %251, %249 : vector<2x32xf32>
      %253 = arith.mulf %244, %arg21 : vector<2x32xf32>
      %254 = arith.addf %252, %253 : vector<2x32xf32>
      %255 = arith.index_cast %191 : i32 to index
      %c0_193 = arith.constant 0 : index
      %c0_194 = arith.constant 0 : index
      %256 = vector.load %arg17[%255, %c0_193, %c0_194] : memref<8x2x32xf32, #tpu.memory_space<vmem>>, vector<1x2x32xf32>
      %257 = vector.shape_cast %256 : vector<1x2x32xf32> to vector<2x32xf32>
      %258 = vector.shape_cast %228 : vector<2x32xf32> to vector<1x2x32xf32>
      tpu.vector_store %arg17[%255, %c0_193, %c0_194], %258 {strides = array<i32>} : memref<8x2x32xf32, #tpu.memory_space<vmem>>, vector<1x2x32xf32>,
      %259 = arith.index_cast %192 : i32 to index
      %c0_195 = arith.constant 0 : index
      %c0_196 = arith.constant 0 : index
      %260 = vector.load %arg18[%259, %c0_195, %c0_196] : memref<8x2x32xf32, #tpu.memory_space<vmem>>, vector<1x2x32xf32>
      %261 = vector.shape_cast %260 : vector<1x2x32xf32> to vector<2x32xf32>
      %262 = vector.shape_cast %254 : vector<2x32xf32> to vector<1x2x32xf32>
      tpu.vector_store %arg18[%259, %c0_195, %c0_196], %262 {strides = array<i32>} : memref<8x2x32xf32, #tpu.memory_space<vmem>>, vector<1x2x32xf32>,
      %c2_i32_197 = arith.constant 2 : i32
      %263 = arith.muli %arg19, %c2_i32_197 : i32
      %c1_i32_198 = arith.constant 1 : i32
      %264 = arith.addi %263, %c1_i32_198 : i32
      %c7_i32_199 = arith.constant 7 : i32
      %265 = arith.subi %c7_i32_199, %264 : i32
      %266 = arith.index_cast %264 : i32 to index
      %c0_200 = arith.constant 0 : index
      %c0_201 = arith.constant 0 : index
      %267 = vector.load %arg16[%266, %c0_200, %c0_201] : memref<8x2x192xf32, #tpu.memory_space<vmem>>, vector<1x2x192xf32>
      %268 = vector.shape_cast %267 : vector<1x2x192xf32> to vector<2x192xf32>
      %269 = arith.index_cast %265 : i32 to index
      %c0_202 = arith.constant 0 : index
      %c0_203 = arith.constant 0 : index
      %270 = vector.load %arg16[%269, %c0_202, %c0_203] : memref<8x2x192xf32, #tpu.memory_space<vmem>>, vector<1x2x192xf32>
      %271 = vector.shape_cast %270 : vector<1x2x192xf32> to vector<2x192xf32>
      %cst_204 = arith.constant dense<0.000000e+00> : vector<2x96xf32>
      %272 = tpu.matmul %228, %11, %cst_204 {dimension_numbers = #tpu.dot_dimension_numbers<[1], [0], [0], [1], [0, 0, 1, 1], [], []>} : vector<2x32xf32>, vector<32x96xf32>, vector<2x96xf32> -> vector<2x96xf32>
      %273 = arith.addf %272, %7 : vector<2x96xf32>
      %cst_205 = arith.constant dense<0.000000e+00> : vector<2x96xf32>
      %274 = tpu.matmul %254, %12, %cst_205 {dimension_numbers = #tpu.dot_dimension_numbers<[1], [0], [0], [1], [0, 0, 1, 1], [], []>} : vector<2x32xf32>, vector<32x96xf32>, vector<2x96xf32> -> vector<2x96xf32>
      %275 = arith.addf %274, %10 : vector<2x96xf32>
      %276 = vector.extract_strided_slice %268 {offsets = [0, 0], sizes = [2, 32], strides = [1, 1]} : vector<2x192xf32> to vector<2x32xf32>
      %277 = vector.extract_strided_slice %273 {offsets = [0, 0], sizes = [2, 32], strides = [1, 1]} : vector<2x96xf32> to vector<2x32xf32>
      %278 = arith.addf %276, %277 : vector<2x32xf32>
      %279 = arith.negf %278 : vector<2x32xf32>
      %280 = math.exp %279 : vector<2x32xf32>
      %cst_206 = arith.constant 1.000000e+00 : f32
      %281 = vector.broadcast %cst_206 : f32 to vector<2x32xf32>
      %282 = arith.addf %281, %280 : vector<2x32xf32>
      %283 = arith.divf %281, %282 : vector<2x32xf32>
      %284 = vector.extract_strided_slice %268 {offsets = [0, 32], sizes = [2, 32], strides = [1, 1]} : vector<2x192xf32> to vector<2x32xf32>
      %285 = vector.extract_strided_slice %273 {offsets = [0, 32], sizes = [2, 32], strides = [1, 1]} : vector<2x96xf32> to vector<2x32xf32>
      %286 = arith.addf %284, %285 : vector<2x32xf32>
      %287 = arith.negf %286 : vector<2x32xf32>
      %288 = math.exp %287 : vector<2x32xf32>
      %cst_207 = arith.constant 1.000000e+00 : f32
      %289 = vector.broadcast %cst_207 : f32 to vector<2x32xf32>
      %290 = arith.addf %289, %288 : vector<2x32xf32>
      %291 = arith.divf %289, %290 : vector<2x32xf32>
      %292 = vector.extract_strided_slice %268 {offsets = [0, 64], sizes = [2, 32], strides = [1, 1]} : vector<2x192xf32> to vector<2x32xf32>
      %293 = vector.extract_strided_slice %273 {offsets = [0, 64], sizes = [2, 32], strides = [1, 1]} : vector<2x96xf32> to vector<2x32xf32>
      %294 = arith.mulf %283, %293 : vector<2x32xf32>
      %295 = arith.addf %292, %294 : vector<2x32xf32>
      %296 = math.tanh %295 : vector<2x32xf32>
      %cst_208 = arith.constant 1.000000e+00 : f32
      %297 = vector.broadcast %cst_208 : f32 to vector<2x32xf32>
      %298 = arith.subf %297, %291 : vector<2x32xf32>
      %299 = arith.mulf %298, %296 : vector<2x32xf32>
      %300 = arith.mulf %291, %228 : vector<2x32xf32>
      %301 = arith.addf %299, %300 : vector<2x32xf32>
      %302 = vector.extract_strided_slice %271 {offsets = [0, 96], sizes = [2, 32], strides = [1, 1]} : vector<2x192xf32> to vector<2x32xf32>
      %303 = vector.extract_strided_slice %275 {offsets = [0, 0], sizes = [2, 32], strides = [1, 1]} : vector<2x96xf32> to vector<2x32xf32>
      %304 = arith.addf %302, %303 : vector<2x32xf32>
      %305 = arith.negf %304 : vector<2x32xf32>
      %306 = math.exp %305 : vector<2x32xf32>
      %cst_209 = arith.constant 1.000000e+00 : f32
      %307 = vector.broadcast %cst_209 : f32 to vector<2x32xf32>
      %308 = arith.addf %307, %306 : vector<2x32xf32>
      %309 = arith.divf %307, %308 : vector<2x32xf32>
      %310 = vector.extract_strided_slice %271 {offsets = [0, 128], sizes = [2, 32], strides = [1, 1]} : vector<2x192xf32> to vector<2x32xf32>
      %311 = vector.extract_strided_slice %275 {offsets = [0, 32], sizes = [2, 32], strides = [1, 1]} : vector<2x96xf32> to vector<2x32xf32>
      %312 = arith.addf %310, %311 : vector<2x32xf32>
      %313 = arith.negf %312 : vector<2x32xf32>
      %314 = math.exp %313 : vector<2x32xf32>
      %cst_210 = arith.constant 1.000000e+00 : f32
      %315 = vector.broadcast %cst_210 : f32 to vector<2x32xf32>
      %316 = arith.addf %315, %314 : vector<2x32xf32>
      %317 = arith.divf %315, %316 : vector<2x32xf32>
      %318 = vector.extract_strided_slice %271 {offsets = [0, 160], sizes = [2, 32], strides = [1, 1]} : vector<2x192xf32> to vector<2x32xf32>
      %319 = vector.extract_strided_slice %275 {offsets = [0, 64], sizes = [2, 32], strides = [1, 1]} : vector<2x96xf32> to vector<2x32xf32>
      %320 = arith.mulf %309, %319 : vector<2x32xf32>
      %321 = arith.addf %318, %320 : vector<2x32xf32>
      %322 = math.tanh %321 : vector<2x32xf32>
      %cst_211 = arith.constant 1.000000e+00 : f32
      %323 = vector.broadcast %cst_211 : f32 to vector<2x32xf32>
      %324 = arith.subf %323, %317 : vector<2x32xf32>
      %325 = arith.mulf %324, %322 : vector<2x32xf32>
      %326 = arith.mulf %317, %254 : vector<2x32xf32>
      %327 = arith.addf %325, %326 : vector<2x32xf32>
      %328 = arith.index_cast %264 : i32 to index
      %c0_212 = arith.constant 0 : index
      %c0_213 = arith.constant 0 : index
      %329 = vector.load %arg17[%328, %c0_212, %c0_213] : memref<8x2x32xf32, #tpu.memory_space<vmem>>, vector<1x2x32xf32>
      %330 = vector.shape_cast %329 : vector<1x2x32xf32> to vector<2x32xf32>
      %331 = vector.shape_cast %301 : vector<2x32xf32> to vector<1x2x32xf32>
      tpu.vector_store %arg17[%328, %c0_212, %c0_213], %331 {strides = array<i32>} : memref<8x2x32xf32, #tpu.memory_space<vmem>>, vector<1x2x32xf32>,
      %332 = arith.index_cast %265 : i32 to index
      %c0_214 = arith.constant 0 : index
      %c0_215 = arith.constant 0 : index
      %333 = vector.load %arg18[%332, %c0_214, %c0_215] : memref<8x2x32xf32, #tpu.memory_space<vmem>>, vector<1x2x32xf32>
      %334 = vector.shape_cast %333 : vector<1x2x32xf32> to vector<2x32xf32>
      %335 = vector.shape_cast %327 : vector<2x32xf32> to vector<1x2x32xf32>
      tpu.vector_store %arg18[%332, %c0_214, %c0_215], %335 {strides = array<i32>} : memref<8x2x32xf32, #tpu.memory_space<vmem>>, vector<1x2x32xf32>,
      scf.yield %301, %327 : vector<2x32xf32>, vector<2x32xf32>
    }
    %c4_i32_61 = arith.constant 4 : i32
    %c0_62 = arith.constant 0 : index
    %c0_63 = arith.constant 0 : index
    %72 = vector.load %arg8[%c0_62, %c0_63] : memref<1x192xf32, #tpu.memory_space<vmem>>, vector<1x192xf32>
    %73 = vector.shape_cast %72 : vector<1x192xf32> to vector<1x192xf32>
    %74 = vector.broadcast %73 : vector<1x192xf32> to vector<2x192xf32>
    %c0_64 = arith.constant 0 : index
    %c0_65 = arith.constant 0 : index
    %75 = vector.load %arg10[%c0_64, %c0_65] : memref<1x96xf32, #tpu.memory_space<vmem>>, vector<1x96xf32>
    %76 = vector.shape_cast %75 : vector<1x96xf32> to vector<1x96xf32>
    %77 = vector.broadcast %76 : vector<1x96xf32> to vector<2x96xf32>
    %c0_66 = arith.constant 0 : index
    %c0_67 = arith.constant 0 : index
    %78 = vector.load %arg12[%c0_66, %c0_67] : memref<1x96xf32, #tpu.memory_space<vmem>>, vector<1x96xf32>
    %79 = vector.shape_cast %78 : vector<1x96xf32> to vector<1x96xf32>
    %80 = vector.broadcast %79 : vector<1x96xf32> to vector<2x96xf32>
    %c0_68 = arith.constant 0 : index
    %c0_69 = arith.constant 0 : index
    %81 = vector.load %arg9[%c0_68, %c0_69] : memref<32x96xf32, #tpu.memory_space<vmem>>, vector<32x96xf32>
    %c0_70 = arith.constant 0 : index
    %c0_71 = arith.constant 0 : index
    %82 = vector.load %arg11[%c0_70, %c0_71] : memref<32x96xf32, #tpu.memory_space<vmem>>, vector<32x96xf32>
    %c0_72 = arith.constant 0 : index
    %c0_73 = arith.constant 0 : index
    %83 = vector.load %arg7[%c0_72, %c0_73] : memref<64x192xf32, #tpu.memory_space<vmem>>, vector<64x192xf32>
    %84 = vector.extract_strided_slice %83 {offsets = [0, 0], sizes = [32, 192], strides = [1, 1]} : vector<64x192xf32> to vector<32x192xf32>
    %85 = vector.extract_strided_slice %83 {offsets = [32, 0], sizes = [32, 192], strides = [1, 1]} : vector<64x192xf32> to vector<32x192xf32>
    %c0_74 = arith.constant 0 : index
    %c0_75 = arith.constant 0 : index
    %c0_76 = arith.constant 0 : index
    %86 = vector.load %arg17[%c0_74, %c0_75, %c0_76] : memref<8x2x32xf32, #tpu.memory_space<vmem>>, vector<1x2x32xf32>
    %87 = vector.shape_cast %86 : vector<1x2x32xf32> to vector<2x32xf32>
    %cst_77 = arith.constant dense<0.000000e+00> : vector<2x192xf32>
    %88 = tpu.matmul %87, %84, %cst_77 {dimension_numbers = #tpu.dot_dimension_numbers<[1], [0], [0], [1], [0, 0, 1, 1], [], []>} : vector<2x32xf32>, vector<32x192xf32>, vector<2x192xf32> -> vector<2x192xf32>
    %c0_78 = arith.constant 0 : index
    %c0_79 = arith.constant 0 : index
    %c0_80 = arith.constant 0 : index
    %89 = vector.load %arg18[%c0_78, %c0_79, %c0_80] : memref<8x2x32xf32, #tpu.memory_space<vmem>>, vector<1x2x32xf32>
    %90 = vector.shape_cast %89 : vector<1x2x32xf32> to vector<2x32xf32>
    %cst_81 = arith.constant dense<0.000000e+00> : vector<2x192xf32>
    %91 = tpu.matmul %90, %85, %cst_81 {dimension_numbers = #tpu.dot_dimension_numbers<[1], [0], [0], [1], [0, 0, 1, 1], [], []>} : vector<2x32xf32>, vector<32x192xf32>, vector<2x192xf32> -> vector<2x192xf32>
    %92 = arith.addf %88, %91 : vector<2x192xf32>
    %93 = arith.addf %92, %74 : vector<2x192xf32>
    %c0_82 = arith.constant 0 : index
    %c0_83 = arith.constant 0 : index
    %c0_84 = arith.constant 0 : index
    %94 = vector.load %arg16[%c0_82, %c0_83, %c0_84] : memref<8x2x192xf32, #tpu.memory_space<vmem>>, vector<1x2x192xf32>
    %95 = vector.shape_cast %94 : vector<1x2x192xf32> to vector<2x192xf32>
    %96 = vector.shape_cast %93 : vector<2x192xf32> to vector<1x2x192xf32>
    tpu.vector_store %arg16[%c0_82, %c0_83, %c0_84], %96 {strides = array<i32>} : memref<8x2x192xf32, #tpu.memory_space<vmem>>, vector<1x2x192xf32>,
    %c1_85 = arith.constant 1 : index
    %c0_86 = arith.constant 0 : index
    %c0_87 = arith.constant 0 : index
    %97 = vector.load %arg17[%c1_85, %c0_86, %c0_87] : memref<8x2x32xf32, #tpu.memory_space<vmem>>, vector<1x2x32xf32>
    %98 = vector.shape_cast %97 : vector<1x2x32xf32> to vector<2x32xf32>
    %cst_88 = arith.constant dense<0.000000e+00> : vector<2x192xf32>
    %99 = tpu.matmul %98, %84, %cst_88 {dimension_numbers = #tpu.dot_dimension_numbers<[1], [0], [0], [1], [0, 0, 1, 1], [], []>} : vector<2x32xf32>, vector<32x192xf32>, vector<2x192xf32> -> vector<2x192xf32>
    %c1_89 = arith.constant 1 : index
    %c0_90 = arith.constant 0 : index
    %c0_91 = arith.constant 0 : index
    %100 = vector.load %arg18[%c1_89, %c0_90, %c0_91] : memref<8x2x32xf32, #tpu.memory_space<vmem>>, vector<1x2x32xf32>
    %101 = vector.shape_cast %100 : vector<1x2x32xf32> to vector<2x32xf32>
    %cst_92 = arith.constant dense<0.000000e+00> : vector<2x192xf32>
    %102 = tpu.matmul %101, %85, %cst_92 {dimension_numbers = #tpu.dot_dimension_numbers<[1], [0], [0], [1], [0, 0, 1, 1], [], []>} : vector<2x32xf32>, vector<32x192xf32>, vector<2x192xf32> -> vector<2x192xf32>
    %103 = arith.addf %99, %102 : vector<2x192xf32>
    %104 = arith.addf %103, %74 : vector<2x192xf32>
    %c1_93 = arith.constant 1 : index
    %c0_94 = arith.constant 0 : index
    %c0_95 = arith.constant 0 : index
    %105 = vector.load %arg16[%c1_93, %c0_94, %c0_95] : memref<8x2x192xf32, #tpu.memory_space<vmem>>, vector<1x2x192xf32>
    %106 = vector.shape_cast %105 : vector<1x2x192xf32> to vector<2x192xf32>
    %107 = vector.shape_cast %104 : vector<2x192xf32> to vector<1x2x192xf32>
    tpu.vector_store %arg16[%c1_93, %c0_94, %c0_95], %107 {strides = array<i32>} : memref<8x2x192xf32, #tpu.memory_space<vmem>>, vector<1x2x192xf32>,
    %c2_96 = arith.constant 2 : index
    %c0_97 = arith.constant 0 : index
    %c0_98 = arith.constant 0 : index
    %108 = vector.load %arg17[%c2_96, %c0_97, %c0_98] : memref<8x2x32xf32, #tpu.memory_space<vmem>>, vector<1x2x32xf32>
    %109 = vector.shape_cast %108 : vector<1x2x32xf32> to vector<2x32xf32>
    %cst_99 = arith.constant dense<0.000000e+00> : vector<2x192xf32>
    %110 = tpu.matmul %109, %84, %cst_99 {dimension_numbers = #tpu.dot_dimension_numbers<[1], [0], [0], [1], [0, 0, 1, 1], [], []>} : vector<2x32xf32>, vector<32x192xf32>, vector<2x192xf32> -> vector<2x192xf32>
    %c2_100 = arith.constant 2 : index
    %c0_101 = arith.constant 0 : index
    %c0_102 = arith.constant 0 : index
    %111 = vector.load %arg18[%c2_100, %c0_101, %c0_102] : memref<8x2x32xf32, #tpu.memory_space<vmem>>, vector<1x2x32xf32>
    %112 = vector.shape_cast %111 : vector<1x2x32xf32> to vector<2x32xf32>
    %cst_103 = arith.constant dense<0.000000e+00> : vector<2x192xf32>
    %113 = tpu.matmul %112, %85, %cst_103 {dimension_numbers = #tpu.dot_dimension_numbers<[1], [0], [0], [1], [0, 0, 1, 1], [], []>} : vector<2x32xf32>, vector<32x192xf32>, vector<2x192xf32> -> vector<2x192xf32>
    %114 = arith.addf %110, %113 : vector<2x192xf32>
    %115 = arith.addf %114, %74 : vector<2x192xf32>
    %c2_104 = arith.constant 2 : index
    %c0_105 = arith.constant 0 : index
    %c0_106 = arith.constant 0 : index
    %116 = vector.load %arg16[%c2_104, %c0_105, %c0_106] : memref<8x2x192xf32, #tpu.memory_space<vmem>>, vector<1x2x192xf32>
    %117 = vector.shape_cast %116 : vector<1x2x192xf32> to vector<2x192xf32>
    %118 = vector.shape_cast %115 : vector<2x192xf32> to vector<1x2x192xf32>
    tpu.vector_store %arg16[%c2_104, %c0_105, %c0_106], %118 {strides = array<i32>} : memref<8x2x192xf32, #tpu.memory_space<vmem>>, vector<1x2x192xf32>,
    %c3_107 = arith.constant 3 : index
    %c0_108 = arith.constant 0 : index
    %c0_109 = arith.constant 0 : index
    %119 = vector.load %arg17[%c3_107, %c0_108, %c0_109] : memref<8x2x32xf32, #tpu.memory_space<vmem>>, vector<1x2x32xf32>
    %120 = vector.shape_cast %119 : vector<1x2x32xf32> to vector<2x32xf32>
    %cst_110 = arith.constant dense<0.000000e+00> : vector<2x192xf32>
    %121 = tpu.matmul %120, %84, %cst_110 {dimension_numbers = #tpu.dot_dimension_numbers<[1], [0], [0], [1], [0, 0, 1, 1], [], []>} : vector<2x32xf32>, vector<32x192xf32>, vector<2x192xf32> -> vector<2x192xf32>
    %c3_111 = arith.constant 3 : index
    %c0_112 = arith.constant 0 : index
    %c0_113 = arith.constant 0 : index
    %122 = vector.load %arg18[%c3_111, %c0_112, %c0_113] : memref<8x2x32xf32, #tpu.memory_space<vmem>>, vector<1x2x32xf32>
    %123 = vector.shape_cast %122 : vector<1x2x32xf32> to vector<2x32xf32>
    %cst_114 = arith.constant dense<0.000000e+00> : vector<2x192xf32>
    %124 = tpu.matmul %123, %85, %cst_114 {dimension_numbers = #tpu.dot_dimension_numbers<[1], [0], [0], [1], [0, 0, 1, 1], [], []>} : vector<2x32xf32>, vector<32x192xf32>, vector<2x192xf32> -> vector<2x192xf32>
    %125 = arith.addf %121, %124 : vector<2x192xf32>
    %126 = arith.addf %125, %74 : vector<2x192xf32>
    %c3_115 = arith.constant 3 : index
    %c0_116 = arith.constant 0 : index
    %c0_117 = arith.constant 0 : index
    %127 = vector.load %arg16[%c3_115, %c0_116, %c0_117] : memref<8x2x192xf32, #tpu.memory_space<vmem>>, vector<1x2x192xf32>
    %128 = vector.shape_cast %127 : vector<1x2x192xf32> to vector<2x192xf32>
    %129 = vector.shape_cast %126 : vector<2x192xf32> to vector<1x2x192xf32>
    tpu.vector_store %arg16[%c3_115, %c0_116, %c0_117], %129 {strides = array<i32>} : memref<8x2x192xf32, #tpu.memory_space<vmem>>, vector<1x2x192xf32>,
    %c4_118 = arith.constant 4 : index
    %c0_119 = arith.constant 0 : index
    %c0_120 = arith.constant 0 : index
    %130 = vector.load %arg17[%c4_118, %c0_119, %c0_120] : memref<8x2x32xf32, #tpu.memory_space<vmem>>, vector<1x2x32xf32>
    %131 = vector.shape_cast %130 : vector<1x2x32xf32> to vector<2x32xf32>
    %cst_121 = arith.constant dense<0.000000e+00> : vector<2x192xf32>
    %132 = tpu.matmul %131, %84, %cst_121 {dimension_numbers = #tpu.dot_dimension_numbers<[1], [0], [0], [1], [0, 0, 1, 1], [], []>} : vector<2x32xf32>, vector<32x192xf32>, vector<2x192xf32> -> vector<2x192xf32>
    %c4_122 = arith.constant 4 : index
    %c0_123 = arith.constant 0 : index
    %c0_124 = arith.constant 0 : index
    %133 = vector.load %arg18[%c4_122, %c0_123, %c0_124] : memref<8x2x32xf32, #tpu.memory_space<vmem>>, vector<1x2x32xf32>
    %134 = vector.shape_cast %133 : vector<1x2x32xf32> to vector<2x32xf32>
    %cst_125 = arith.constant dense<0.000000e+00> : vector<2x192xf32>
    %135 = tpu.matmul %134, %85, %cst_125 {dimension_numbers = #tpu.dot_dimension_numbers<[1], [0], [0], [1], [0, 0, 1, 1], [], []>} : vector<2x32xf32>, vector<32x192xf32>, vector<2x192xf32> -> vector<2x192xf32>
    %136 = arith.addf %132, %135 : vector<2x192xf32>
    %137 = arith.addf %136, %74 : vector<2x192xf32>
    %c4_126 = arith.constant 4 : index
    %c0_127 = arith.constant 0 : index
    %c0_128 = arith.constant 0 : index
    %138 = vector.load %arg16[%c4_126, %c0_127, %c0_128] : memref<8x2x192xf32, #tpu.memory_space<vmem>>, vector<1x2x192xf32>
    %139 = vector.shape_cast %138 : vector<1x2x192xf32> to vector<2x192xf32>
    %140 = vector.shape_cast %137 : vector<2x192xf32> to vector<1x2x192xf32>
    tpu.vector_store %arg16[%c4_126, %c0_127, %c0_128], %140 {strides = array<i32>} : memref<8x2x192xf32, #tpu.memory_space<vmem>>, vector<1x2x192xf32>,
    %c5_129 = arith.constant 5 : index
    %c0_130 = arith.constant 0 : index
    %c0_131 = arith.constant 0 : index
    %141 = vector.load %arg17[%c5_129, %c0_130, %c0_131] : memref<8x2x32xf32, #tpu.memory_space<vmem>>, vector<1x2x32xf32>
    %142 = vector.shape_cast %141 : vector<1x2x32xf32> to vector<2x32xf32>
    %cst_132 = arith.constant dense<0.000000e+00> : vector<2x192xf32>
    %143 = tpu.matmul %142, %84, %cst_132 {dimension_numbers = #tpu.dot_dimension_numbers<[1], [0], [0], [1], [0, 0, 1, 1], [], []>} : vector<2x32xf32>, vector<32x192xf32>, vector<2x192xf32> -> vector<2x192xf32>
    %c5_133 = arith.constant 5 : index
    %c0_134 = arith.constant 0 : index
    %c0_135 = arith.constant 0 : index
    %144 = vector.load %arg18[%c5_133, %c0_134, %c0_135] : memref<8x2x32xf32, #tpu.memory_space<vmem>>, vector<1x2x32xf32>
    %145 = vector.shape_cast %144 : vector<1x2x32xf32> to vector<2x32xf32>
    %cst_136 = arith.constant dense<0.000000e+00> : vector<2x192xf32>
    %146 = tpu.matmul %145, %85, %cst_136 {dimension_numbers = #tpu.dot_dimension_numbers<[1], [0], [0], [1], [0, 0, 1, 1], [], []>} : vector<2x32xf32>, vector<32x192xf32>, vector<2x192xf32> -> vector<2x192xf32>
    %147 = arith.addf %143, %146 : vector<2x192xf32>
    %148 = arith.addf %147, %74 : vector<2x192xf32>
    %c5_137 = arith.constant 5 : index
    %c0_138 = arith.constant 0 : index
    %c0_139 = arith.constant 0 : index
    %149 = vector.load %arg16[%c5_137, %c0_138, %c0_139] : memref<8x2x192xf32, #tpu.memory_space<vmem>>, vector<1x2x192xf32>
    %150 = vector.shape_cast %149 : vector<1x2x192xf32> to vector<2x192xf32>
    %151 = vector.shape_cast %148 : vector<2x192xf32> to vector<1x2x192xf32>
    tpu.vector_store %arg16[%c5_137, %c0_138, %c0_139], %151 {strides = array<i32>} : memref<8x2x192xf32, #tpu.memory_space<vmem>>, vector<1x2x192xf32>,
    %c6_140 = arith.constant 6 : index
    %c0_141 = arith.constant 0 : index
    %c0_142 = arith.constant 0 : index
    %152 = vector.load %arg17[%c6_140, %c0_141, %c0_142] : memref<8x2x32xf32, #tpu.memory_space<vmem>>, vector<1x2x32xf32>
    %153 = vector.shape_cast %152 : vector<1x2x32xf32> to vector<2x32xf32>
    %cst_143 = arith.constant dense<0.000000e+00> : vector<2x192xf32>
    %154 = tpu.matmul %153, %84, %cst_143 {dimension_numbers = #tpu.dot_dimension_numbers<[1], [0], [0], [1], [0, 0, 1, 1], [], []>} : vector<2x32xf32>, vector<32x192xf32>, vector<2x192xf32> -> vector<2x192xf32>
    %c6_144 = arith.constant 6 : index
    %c0_145 = arith.constant 0 : index
    %c0_146 = arith.constant 0 : index
    %155 = vector.load %arg18[%c6_144, %c0_145, %c0_146] : memref<8x2x32xf32, #tpu.memory_space<vmem>>, vector<1x2x32xf32>
    %156 = vector.shape_cast %155 : vector<1x2x32xf32> to vector<2x32xf32>
    %cst_147 = arith.constant dense<0.000000e+00> : vector<2x192xf32>
    %157 = tpu.matmul %156, %85, %cst_147 {dimension_numbers = #tpu.dot_dimension_numbers<[1], [0], [0], [1], [0, 0, 1, 1], [], []>} : vector<2x32xf32>, vector<32x192xf32>, vector<2x192xf32> -> vector<2x192xf32>
    %158 = arith.addf %154, %157 : vector<2x192xf32>
    %159 = arith.addf %158, %74 : vector<2x192xf32>
    %c6_148 = arith.constant 6 : index
    %c0_149 = arith.constant 0 : index
    %c0_150 = arith.constant 0 : index
    %160 = vector.load %arg16[%c6_148, %c0_149, %c0_150] : memref<8x2x192xf32, #tpu.memory_space<vmem>>, vector<1x2x192xf32>
    %161 = vector.shape_cast %160 : vector<1x2x192xf32> to vector<2x192xf32>
    %162 = vector.shape_cast %159 : vector<2x192xf32> to vector<1x2x192xf32>
    tpu.vector_store %arg16[%c6_148, %c0_149, %c0_150], %162 {strides = array<i32>} : memref<8x2x192xf32, #tpu.memory_space<vmem>>, vector<1x2x192xf32>,
    %c7_151 = arith.constant 7 : index
    %c0_152 = arith.constant 0 : index
    %c0_153 = arith.constant 0 : index
    %163 = vector.load %arg17[%c7_151, %c0_152, %c0_153] : memref<8x2x32xf32, #tpu.memory_space<vmem>>, vector<1x2x32xf32>
    %164 = vector.shape_cast %163 : vector<1x2x32xf32> to vector<2x32xf32>
    %cst_154 = arith.constant dense<0.000000e+00> : vector<2x192xf32>
    %165 = tpu.matmul %164, %84, %cst_154 {dimension_numbers = #tpu.dot_dimension_numbers<[1], [0], [0], [1], [0, 0, 1, 1], [], []>} : vector<2x32xf32>, vector<32x192xf32>, vector<2x192xf32> -> vector<2x192xf32>
    %c7_155 = arith.constant 7 : index
    %c0_156 = arith.constant 0 : index
    %c0_157 = arith.constant 0 : index
    %166 = vector.load %arg18[%c7_155, %c0_156, %c0_157] : memref<8x2x32xf32, #tpu.memory_space<vmem>>, vector<1x2x32xf32>
    %167 = vector.shape_cast %166 : vector<1x2x32xf32> to vector<2x32xf32>
    %cst_158 = arith.constant dense<0.000000e+00> : vector<2x192xf32>
    %168 = tpu.matmul %167, %85, %cst_158 {dimension_numbers = #tpu.dot_dimension_numbers<[1], [0], [0], [1], [0, 0, 1, 1], [], []>} : vector<2x32xf32>, vector<32x192xf32>, vector<2x192xf32> -> vector<2x192xf32>
    %169 = arith.addf %165, %168 : vector<2x192xf32>
    %170 = arith.addf %169, %74 : vector<2x192xf32>
    %c7_159 = arith.constant 7 : index
    %c0_160 = arith.constant 0 : index
    %c0_161 = arith.constant 0 : index
    %171 = vector.load %arg16[%c7_159, %c0_160, %c0_161] : memref<8x2x192xf32, #tpu.memory_space<vmem>>, vector<1x2x192xf32>
    %172 = vector.shape_cast %171 : vector<1x2x192xf32> to vector<2x192xf32>
    %173 = vector.shape_cast %170 : vector<2x192xf32> to vector<1x2x192xf32>
    tpu.vector_store %arg16[%c7_159, %c0_160, %c0_161], %173 {strides = array<i32>} : memref<8x2x192xf32, #tpu.memory_space<vmem>>, vector<1x2x192xf32>,
    %c0_i32_162 = arith.constant 0 : i32
    %c4_i32_163 = arith.constant 4 : i32
    %174 = arith.addi %c0_i32_162, %c4_i32_163 : i32
    %c1_i32_164 = arith.constant 1 : i32
    %175:2 = scf.for %arg19 = %c0_i32_162 to %174 step %c1_i32_164 iter_args(%arg20 = %71#0, %arg21 = %71#1) -> (vector<2x32xf32>, vector<2x32xf32>)  : i32 {
      %c2_i32 = arith.constant 2 : i32
      %190 = arith.muli %arg19, %c2_i32 : i32
      %c0_i32_180 = arith.constant 0 : i32
      %191 = arith.addi %190, %c0_i32_180 : i32
      %c7_i32 = arith.constant 7 : i32
      %192 = arith.subi %c7_i32, %191 : i32
      %193 = arith.index_cast %191 : i32 to index
      %c0_181 = arith.constant 0 : index
      %c0_182 = arith.constant 0 : index
      %194 = vector.load %arg16[%193, %c0_181, %c0_182] : memref<8x2x192xf32, #tpu.memory_space<vmem>>, vector<1x2x192xf32>
      %195 = vector.shape_cast %194 : vector<1x2x192xf32> to vector<2x192xf32>
      %196 = arith.index_cast %192 : i32 to index
      %c0_183 = arith.constant 0 : index
      %c0_184 = arith.constant 0 : index
      %197 = vector.load %arg16[%196, %c0_183, %c0_184] : memref<8x2x192xf32, #tpu.memory_space<vmem>>, vector<1x2x192xf32>
      %198 = vector.shape_cast %197 : vector<1x2x192xf32> to vector<2x192xf32>
      %cst_185 = arith.constant dense<0.000000e+00> : vector<2x96xf32>
      %199 = tpu.matmul %arg20, %81, %cst_185 {dimension_numbers = #tpu.dot_dimension_numbers<[1], [0], [0], [1], [0, 0, 1, 1], [], []>} : vector<2x32xf32>, vector<32x96xf32>, vector<2x96xf32> -> vector<2x96xf32>
      %200 = arith.addf %199, %77 : vector<2x96xf32>
      %cst_186 = arith.constant dense<0.000000e+00> : vector<2x96xf32>
      %201 = tpu.matmul %arg21, %82, %cst_186 {dimension_numbers = #tpu.dot_dimension_numbers<[1], [0], [0], [1], [0, 0, 1, 1], [], []>} : vector<2x32xf32>, vector<32x96xf32>, vector<2x96xf32> -> vector<2x96xf32>
      %202 = arith.addf %201, %80 : vector<2x96xf32>
      %203 = vector.extract_strided_slice %195 {offsets = [0, 0], sizes = [2, 32], strides = [1, 1]} : vector<2x192xf32> to vector<2x32xf32>
      %204 = vector.extract_strided_slice %200 {offsets = [0, 0], sizes = [2, 32], strides = [1, 1]} : vector<2x96xf32> to vector<2x32xf32>
      %205 = arith.addf %203, %204 : vector<2x32xf32>
      %206 = arith.negf %205 : vector<2x32xf32>
      %207 = math.exp %206 : vector<2x32xf32>
      %cst_187 = arith.constant 1.000000e+00 : f32
      %208 = vector.broadcast %cst_187 : f32 to vector<2x32xf32>
      %209 = arith.addf %208, %207 : vector<2x32xf32>
      %210 = arith.divf %208, %209 : vector<2x32xf32>
      %211 = vector.extract_strided_slice %195 {offsets = [0, 32], sizes = [2, 32], strides = [1, 1]} : vector<2x192xf32> to vector<2x32xf32>
      %212 = vector.extract_strided_slice %200 {offsets = [0, 32], sizes = [2, 32], strides = [1, 1]} : vector<2x96xf32> to vector<2x32xf32>
      %213 = arith.addf %211, %212 : vector<2x32xf32>
      %214 = arith.negf %213 : vector<2x32xf32>
      %215 = math.exp %214 : vector<2x32xf32>
      %cst_188 = arith.constant 1.000000e+00 : f32
      %216 = vector.broadcast %cst_188 : f32 to vector<2x32xf32>
      %217 = arith.addf %216, %215 : vector<2x32xf32>
      %218 = arith.divf %216, %217 : vector<2x32xf32>
      %219 = vector.extract_strided_slice %195 {offsets = [0, 64], sizes = [2, 32], strides = [1, 1]} : vector<2x192xf32> to vector<2x32xf32>
      %220 = vector.extract_strided_slice %200 {offsets = [0, 64], sizes = [2, 32], strides = [1, 1]} : vector<2x96xf32> to vector<2x32xf32>
      %221 = arith.mulf %210, %220 : vector<2x32xf32>
      %222 = arith.addf %219, %221 : vector<2x32xf32>
      %223 = math.tanh %222 : vector<2x32xf32>
      %cst_189 = arith.constant 1.000000e+00 : f32
      %224 = vector.broadcast %cst_189 : f32 to vector<2x32xf32>
      %225 = arith.subf %224, %218 : vector<2x32xf32>
      %226 = arith.mulf %225, %223 : vector<2x32xf32>
      %227 = arith.mulf %218, %arg20 : vector<2x32xf32>
      %228 = arith.addf %226, %227 : vector<2x32xf32>
      %229 = vector.extract_strided_slice %198 {offsets = [0, 96], sizes = [2, 32], strides = [1, 1]} : vector<2x192xf32> to vector<2x32xf32>
      %230 = vector.extract_strided_slice %202 {offsets = [0, 0], sizes = [2, 32], strides = [1, 1]} : vector<2x96xf32> to vector<2x32xf32>
      %231 = arith.addf %229, %230 : vector<2x32xf32>
      %232 = arith.negf %231 : vector<2x32xf32>
      %233 = math.exp %232 : vector<2x32xf32>
      %cst_190 = arith.constant 1.000000e+00 : f32
      %234 = vector.broadcast %cst_190 : f32 to vector<2x32xf32>
      %235 = arith.addf %234, %233 : vector<2x32xf32>
      %236 = arith.divf %234, %235 : vector<2x32xf32>
      %237 = vector.extract_strided_slice %198 {offsets = [0, 128], sizes = [2, 32], strides = [1, 1]} : vector<2x192xf32> to vector<2x32xf32>
      %238 = vector.extract_strided_slice %202 {offsets = [0, 32], sizes = [2, 32], strides = [1, 1]} : vector<2x96xf32> to vector<2x32xf32>
      %239 = arith.addf %237, %238 : vector<2x32xf32>
      %240 = arith.negf %239 : vector<2x32xf32>
      %241 = math.exp %240 : vector<2x32xf32>
      %cst_191 = arith.constant 1.000000e+00 : f32
      %242 = vector.broadcast %cst_191 : f32 to vector<2x32xf32>
      %243 = arith.addf %242, %241 : vector<2x32xf32>
      %244 = arith.divf %242, %243 : vector<2x32xf32>
      %245 = vector.extract_strided_slice %198 {offsets = [0, 160], sizes = [2, 32], strides = [1, 1]} : vector<2x192xf32> to vector<2x32xf32>
      %246 = vector.extract_strided_slice %202 {offsets = [0, 64], sizes = [2, 32], strides = [1, 1]} : vector<2x96xf32> to vector<2x32xf32>
      %247 = arith.mulf %236, %246 : vector<2x32xf32>
      %248 = arith.addf %245, %247 : vector<2x32xf32>
      %249 = math.tanh %248 : vector<2x32xf32>
      %cst_192 = arith.constant 1.000000e+00 : f32
      %250 = vector.broadcast %cst_192 : f32 to vector<2x32xf32>
      %251 = arith.subf %250, %244 : vector<2x32xf32>
      %252 = arith.mulf %251, %249 : vector<2x32xf32>
      %253 = arith.mulf %244, %arg21 : vector<2x32xf32>
      %254 = arith.addf %252, %253 : vector<2x32xf32>
      %255 = arith.addf %228, %228 : vector<2x32xf32>
      %256 = arith.index_cast %191 : i32 to index
      %c0_193 = arith.constant 0 : index
      %c0_194 = arith.constant 0 : index
      %257 = vector.load %arg17[%256, %c0_193, %c0_194] : memref<8x2x32xf32, #tpu.memory_space<vmem>>, vector<1x2x32xf32>
      %258 = vector.shape_cast %257 : vector<1x2x32xf32> to vector<2x32xf32>
      %259 = vector.shape_cast %255 : vector<2x32xf32> to vector<1x2x32xf32>
      tpu.vector_store %arg17[%256, %c0_193, %c0_194], %259 {strides = array<i32>} : memref<8x2x32xf32, #tpu.memory_space<vmem>>, vector<1x2x32xf32>,
      %260 = arith.addf %254, %254 : vector<2x32xf32>
      %261 = arith.index_cast %192 : i32 to index
      %c0_195 = arith.constant 0 : index
      %c0_196 = arith.constant 0 : index
      %262 = vector.load %arg18[%261, %c0_195, %c0_196] : memref<8x2x32xf32, #tpu.memory_space<vmem>>, vector<1x2x32xf32>
      %263 = vector.shape_cast %262 : vector<1x2x32xf32> to vector<2x32xf32>
      %264 = vector.shape_cast %260 : vector<2x32xf32> to vector<1x2x32xf32>
      tpu.vector_store %arg18[%261, %c0_195, %c0_196], %264 {strides = array<i32>} : memref<8x2x32xf32, #tpu.memory_space<vmem>>, vector<1x2x32xf32>,
      %c2_i32_197 = arith.constant 2 : i32
      %265 = arith.muli %arg19, %c2_i32_197 : i32
      %c1_i32_198 = arith.constant 1 : i32
      %266 = arith.addi %265, %c1_i32_198 : i32
      %c7_i32_199 = arith.constant 7 : i32
      %267 = arith.subi %c7_i32_199, %266 : i32
      %268 = arith.index_cast %266 : i32 to index
      %c0_200 = arith.constant 0 : index
      %c0_201 = arith.constant 0 : index
      %269 = vector.load %arg16[%268, %c0_200, %c0_201] : memref<8x2x192xf32, #tpu.memory_space<vmem>>, vector<1x2x192xf32>
      %270 = vector.shape_cast %269 : vector<1x2x192xf32> to vector<2x192xf32>
      %271 = arith.index_cast %267 : i32 to index
      %c0_202 = arith.constant 0 : index
      %c0_203 = arith.constant 0 : index
      %272 = vector.load %arg16[%271, %c0_202, %c0_203] : memref<8x2x192xf32, #tpu.memory_space<vmem>>, vector<1x2x192xf32>
      %273 = vector.shape_cast %272 : vector<1x2x192xf32> to vector<2x192xf32>
      %cst_204 = arith.constant dense<0.000000e+00> : vector<2x96xf32>
      %274 = tpu.matmul %228, %81, %cst_204 {dimension_numbers = #tpu.dot_dimension_numbers<[1], [0], [0], [1], [0, 0, 1, 1], [], []>} : vector<2x32xf32>, vector<32x96xf32>, vector<2x96xf32> -> vector<2x96xf32>
      %275 = arith.addf %274, %77 : vector<2x96xf32>
      %cst_205 = arith.constant dense<0.000000e+00> : vector<2x96xf32>
      %276 = tpu.matmul %254, %82, %cst_205 {dimension_numbers = #tpu.dot_dimension_numbers<[1], [0], [0], [1], [0, 0, 1, 1], [], []>} : vector<2x32xf32>, vector<32x96xf32>, vector<2x96xf32> -> vector<2x96xf32>
      %277 = arith.addf %276, %80 : vector<2x96xf32>
      %278 = vector.extract_strided_slice %270 {offsets = [0, 0], sizes = [2, 32], strides = [1, 1]} : vector<2x192xf32> to vector<2x32xf32>
      %279 = vector.extract_strided_slice %275 {offsets = [0, 0], sizes = [2, 32], strides = [1, 1]} : vector<2x96xf32> to vector<2x32xf32>
      %280 = arith.addf %278, %279 : vector<2x32xf32>
      %281 = arith.negf %280 : vector<2x32xf32>
      %282 = math.exp %281 : vector<2x32xf32>
      %cst_206 = arith.constant 1.000000e+00 : f32
      %283 = vector.broadcast %cst_206 : f32 to vector<2x32xf32>
      %284 = arith.addf %283, %282 : vector<2x32xf32>
      %285 = arith.divf %283, %284 : vector<2x32xf32>
      %286 = vector.extract_strided_slice %270 {offsets = [0, 32], sizes = [2, 32], strides = [1, 1]} : vector<2x192xf32> to vector<2x32xf32>
      %287 = vector.extract_strided_slice %275 {offsets = [0, 32], sizes = [2, 32], strides = [1, 1]} : vector<2x96xf32> to vector<2x32xf32>
      %288 = arith.addf %286, %287 : vector<2x32xf32>
      %289 = arith.negf %288 : vector<2x32xf32>
      %290 = math.exp %289 : vector<2x32xf32>
      %cst_207 = arith.constant 1.000000e+00 : f32
      %291 = vector.broadcast %cst_207 : f32 to vector<2x32xf32>
      %292 = arith.addf %291, %290 : vector<2x32xf32>
      %293 = arith.divf %291, %292 : vector<2x32xf32>
      %294 = vector.extract_strided_slice %270 {offsets = [0, 64], sizes = [2, 32], strides = [1, 1]} : vector<2x192xf32> to vector<2x32xf32>
      %295 = vector.extract_strided_slice %275 {offsets = [0, 64], sizes = [2, 32], strides = [1, 1]} : vector<2x96xf32> to vector<2x32xf32>
      %296 = arith.mulf %285, %295 : vector<2x32xf32>
      %297 = arith.addf %294, %296 : vector<2x32xf32>
      %298 = math.tanh %297 : vector<2x32xf32>
      %cst_208 = arith.constant 1.000000e+00 : f32
      %299 = vector.broadcast %cst_208 : f32 to vector<2x32xf32>
      %300 = arith.subf %299, %293 : vector<2x32xf32>
      %301 = arith.mulf %300, %298 : vector<2x32xf32>
      %302 = arith.mulf %293, %228 : vector<2x32xf32>
      %303 = arith.addf %301, %302 : vector<2x32xf32>
      %304 = vector.extract_strided_slice %273 {offsets = [0, 96], sizes = [2, 32], strides = [1, 1]} : vector<2x192xf32> to vector<2x32xf32>
      %305 = vector.extract_strided_slice %277 {offsets = [0, 0], sizes = [2, 32], strides = [1, 1]} : vector<2x96xf32> to vector<2x32xf32>
      %306 = arith.addf %304, %305 : vector<2x32xf32>
      %307 = arith.negf %306 : vector<2x32xf32>
      %308 = math.exp %307 : vector<2x32xf32>
      %cst_209 = arith.constant 1.000000e+00 : f32
      %309 = vector.broadcast %cst_209 : f32 to vector<2x32xf32>
      %310 = arith.addf %309, %308 : vector<2x32xf32>
      %311 = arith.divf %309, %310 : vector<2x32xf32>
      %312 = vector.extract_strided_slice %273 {offsets = [0, 128], sizes = [2, 32], strides = [1, 1]} : vector<2x192xf32> to vector<2x32xf32>
      %313 = vector.extract_strided_slice %277 {offsets = [0, 32], sizes = [2, 32], strides = [1, 1]} : vector<2x96xf32> to vector<2x32xf32>
      %314 = arith.addf %312, %313 : vector<2x32xf32>
      %315 = arith.negf %314 : vector<2x32xf32>
      %316 = math.exp %315 : vector<2x32xf32>
      %cst_210 = arith.constant 1.000000e+00 : f32
      %317 = vector.broadcast %cst_210 : f32 to vector<2x32xf32>
      %318 = arith.addf %317, %316 : vector<2x32xf32>
      %319 = arith.divf %317, %318 : vector<2x32xf32>
      %320 = vector.extract_strided_slice %273 {offsets = [0, 160], sizes = [2, 32], strides = [1, 1]} : vector<2x192xf32> to vector<2x32xf32>
      %321 = vector.extract_strided_slice %277 {offsets = [0, 64], sizes = [2, 32], strides = [1, 1]} : vector<2x96xf32> to vector<2x32xf32>
      %322 = arith.mulf %311, %321 : vector<2x32xf32>
      %323 = arith.addf %320, %322 : vector<2x32xf32>
      %324 = math.tanh %323 : vector<2x32xf32>
      %cst_211 = arith.constant 1.000000e+00 : f32
      %325 = vector.broadcast %cst_211 : f32 to vector<2x32xf32>
      %326 = arith.subf %325, %319 : vector<2x32xf32>
      %327 = arith.mulf %326, %324 : vector<2x32xf32>
      %328 = arith.mulf %319, %254 : vector<2x32xf32>
      %329 = arith.addf %327, %328 : vector<2x32xf32>
      %330 = arith.addf %303, %303 : vector<2x32xf32>
      %331 = arith.index_cast %266 : i32 to index
      %c0_212 = arith.constant 0 : index
      %c0_213 = arith.constant 0 : index
      %332 = vector.load %arg17[%331, %c0_212, %c0_213] : memref<8x2x32xf32, #tpu.memory_space<vmem>>, vector<1x2x32xf32>
      %333 = vector.shape_cast %332 : vector<1x2x32xf32> to vector<2x32xf32>
      %334 = vector.shape_cast %330 : vector<2x32xf32> to vector<1x2x32xf32>
      tpu.vector_store %arg17[%331, %c0_212, %c0_213], %334 {strides = array<i32>} : memref<8x2x32xf32, #tpu.memory_space<vmem>>, vector<1x2x32xf32>,
      %335 = arith.addf %329, %329 : vector<2x32xf32>
      %336 = arith.index_cast %267 : i32 to index
      %c0_214 = arith.constant 0 : index
      %c0_215 = arith.constant 0 : index
      %337 = vector.load %arg18[%336, %c0_214, %c0_215] : memref<8x2x32xf32, #tpu.memory_space<vmem>>, vector<1x2x32xf32>
      %338 = vector.shape_cast %337 : vector<1x2x32xf32> to vector<2x32xf32>
      %339 = vector.shape_cast %335 : vector<2x32xf32> to vector<1x2x32xf32>
      tpu.vector_store %arg18[%336, %c0_214, %c0_215], %339 {strides = array<i32>} : memref<8x2x32xf32, #tpu.memory_space<vmem>>, vector<1x2x32xf32>,
      scf.yield %303, %329 : vector<2x32xf32>, vector<2x32xf32>
    }
    %c4_i32_165 = arith.constant 4 : i32
    %c7_166 = arith.constant 7 : index
    %c0_167 = arith.constant 0 : index
    %c0_168 = arith.constant 0 : index
    %176 = vector.load %arg17[%c7_166, %c0_167, %c0_168] : memref<8x2x32xf32, #tpu.memory_space<vmem>>, vector<1x2x32xf32>
    %177 = vector.shape_cast %176 : vector<1x2x32xf32> to vector<2x32xf32>
    %c7_169 = arith.constant 7 : index
    %c0_170 = arith.constant 0 : index
    %c0_171 = arith.constant 0 : index
    %178 = vector.load %arg18[%c7_169, %c0_170, %c0_171] : memref<8x2x32xf32, #tpu.memory_space<vmem>>, vector<1x2x32xf32>
    %179 = vector.shape_cast %178 : vector<1x2x32xf32> to vector<2x32xf32>
    %c0_172 = arith.constant 0 : index
    %c0_173 = arith.constant 0 : index
    %180 = vector.load %arg13[%c0_172, %c0_173] : memref<64x4xf32, #tpu.memory_space<vmem>>, vector<64x4xf32>
    %181 = vector.extract_strided_slice %180 {offsets = [0, 0], sizes = [32, 4], strides = [1, 1]} : vector<64x4xf32> to vector<32x4xf32>
    %cst_174 = arith.constant dense<0.000000e+00> : vector<2x4xf32>
    %182 = tpu.matmul %177, %181, %cst_174 {dimension_numbers = #tpu.dot_dimension_numbers<[1], [0], [0], [1], [0, 0, 1, 1], [], []>} : vector<2x32xf32>, vector<32x4xf32>, vector<2x4xf32> -> vector<2x4xf32>
    %183 = vector.extract_strided_slice %180 {offsets = [32, 0], sizes = [32, 4], strides = [1, 1]} : vector<64x4xf32> to vector<32x4xf32>
    %cst_175 = arith.constant dense<0.000000e+00> : vector<2x4xf32>
    %184 = tpu.matmul %179, %183, %cst_175 {dimension_numbers = #tpu.dot_dimension_numbers<[1], [0], [0], [1], [0, 0, 1, 1], [], []>} : vector<2x32xf32>, vector<32x4xf32>, vector<2x4xf32> -> vector<2x4xf32>
    %185 = arith.addf %182, %184 : vector<2x4xf32>
    %c0_176 = arith.constant 0 : index
    %c0_177 = arith.constant 0 : index
    %186 = vector.load %arg14[%c0_176, %c0_177] : memref<1x4xf32, #tpu.memory_space<vmem>>, vector<1x4xf32>
    %187 = vector.broadcast %186 : vector<1x4xf32> to vector<2x4xf32>
    %188 = arith.addf %185, %187 : vector<2x4xf32>
    %c0_178 = arith.constant 0 : index
    %c0_179 = arith.constant 0 : index
    %189 = vector.load %arg15[%c0_178, %c0_179] : memref<2x4xf32, #tpu.memory_space<vmem>>, vector<2x4xf32>
    tpu.vector_store %arg15[%c0_178, %c0_179], %188 {strides = array<i32>} : memref<2x4xf32, #tpu.memory_space<vmem>>, vector<2x4xf32>,
    return
  }
}

</mosaic_0001>

<bundles_post_ra>
// kernel: multi_residual_bigru.1
= control target key start
LH: loop header
LB: loop body
LE: loop exit
PB: predicated region body
PF: predicated region fallthrough
CT: control target
= control target key end

     0   :  { %20 = vsyncpa [#allocation6], 0  ;;  %s5066_s0 = inlined_call_operand.vmem [shape: f32[8,2,8], index: 0, kind: input, shape index: {}]   ;;  %s5067_s1 = inlined_call_operand.vmem [shape: f32[8,192], index: 1, kind: input, shape index: {}]   ;;  %s5068_s2 = inlined_call_operand.vmem [shape: f32[1,192], index: 2, kind: input, shape index: {}]   ;;  %s5069_s3 = inlined_call_operand.hbm [shape: f32[32,96], index: 3, kind: input, shape index: {}]   ;;  %s5070_s4 = inlined_call_operand.vmem [shape: f32[1,96], index: 4, kind: input, shape index: {}]   ;;  %s5071_s5 = inlined_call_operand.hbm [shape: f32[32,96], index: 5, kind: input, shape index: {}]   ;;  %s5072_s6 = inlined_call_operand.vmem [shape: f32[1,96], index: 6, kind: input, shape index: {}]   ;;  %s5073_s7 = inlined_call_operand.vmem [shape: f32[64,192], index: 7, kind: input, shape index: {}]   ;;  %s5074_s8 = inlined_call_operand.vmem [shape: f32[1,192], index: 8, kind: input, shape index: {}]   ;;  %s5075_s9 = inlined_call_operand.hbm [shape: f32[32,96], index: 9, kind: input, shape index: {}]   ;;  %s5076_s10 = inlined_call_operand.vmem [shape: f32[1,96], index: 10, kind: input, shape index: {}]   ;;  %s5077_s11 = inlined_call_operand.hbm [shape: f32[32,96], index: 11, kind: input, shape index: {}]   ;;  %s5078_s12 = inlined_call_operand.vmem [shape: f32[1,96], index: 12, kind: input, shape index: {}]   ;;  %s5079_s13 = inlined_call_operand.vmem [shape: f32[64,4], index: 13, kind: input, shape index: {}]   ;;  %s5080_s14 = inlined_call_operand.vmem [shape: f32[1,4], index: 14, kind: input, shape index: {}]   ;;  %s5081_s15 = inlined_call_operand.hbm [shape: f32[2,4], index: 15, kind: output, shape index: {}]  }
   0x1   :  { %21 = vsyncpa [#allocation9], 0 }
   0x2   :  { %22 = vsyncpa [#allocation12], 0 }
   0x3   :  { %23 = vsyncpa [#allocation7], 0  ;;  %s4288_s18 = smov [#allocation8]   ;;  %s4289_s20 = smov [#allocation5]  }
   0x4   :  { %s49_s19 = sshll.u32 %s4288_s18, 4  ;;  %s35_s21 = sshll.u32 %s4289_s20, 4  ;;  %s50_s19 = int_to_ptr.vmem [resolvable:$true] %s49_s19  ;;  %s4391_s21 = int_to_ptr.vmem [resolvable:$true] %s35_s21 }
   0x5   :  { %s4122_s24 = scalar_lea.hbm %s5071_s5, 512 }
   0x6   :  { %p4123_p0 = scmp.ne.s32.totalorder %s5071_s5, %s4122_s24  ;;  %p4126_p1 = scmp.lt.u32.totalorder %s4122_s24, %s5071_s5 }
   0x8   :  { %p4128_p2 = pnand %p4126_p1, %p4123_p0 }
   0xa   :  { %4131 = shalt.err (!%p4128_p2)
}
   0xb   :  { %s4132_s29 = scalar_lea.vmem %s50_s19, 512  ;;  %p4137_p4 = scmp.lt.s32.totalorder %s50_s19, %s50_s19 }
   0xc   :  { %p4133_p3 = scmp.ne.s32.totalorder %s50_s19, %s4132_s29  ;;  %p4138_p5 = scmp.lt.s32.totalorder %s4132_s29, %s4132_s29 }
   0xe   :  { %p4139_p6 = por %p4138_p5, %p4137_p4 }
  0x10   :  { %p4140_p7 = pnand %p4139_p6, %p4133_p3 }
  0x12   :  { %4143 = shalt.err (!%p4140_p7)
}
  0x13   :  { %s4290_s30 = smov 128   ;;  %s4291_s16 = smov 8  }
  0x14   :  { %55 = dma.hbm_to_vmem [thread:$0]  %s5071_s5, 512, %s50_s19, [#allocation9], %s4290_s30, %s4290_s30, %s4291_s16  }
  0x15   :  { %s4144_s23 = scalar_lea.hbm %s5069_s3, 512 }
  0x16   :  { %p4145_p8 = scmp.ne.s32.totalorder %s5069_s3, %s4144_s23  ;;  %p4148_p9 = scmp.lt.u32.totalorder %s4144_s23, %s5069_s3 }
  0x18   :  { %p4150_p10 = pnand %p4148_p9, %p4145_p8 }
  0x1a   :  { %4153 = shalt.err (!%p4150_p10)
}
  0x1b   :  { %s4154_s28 = scalar_lea.vmem %s4391_s21, 512  ;;  %p4159_p12 = scmp.lt.s32.totalorder %s4391_s21, %s4391_s21 }
  0x1c   :  { %p4155_p11 = scmp.ne.s32.totalorder %s4391_s21, %s4154_s28  ;;  %p4160_p13 = scmp.lt.s32.totalorder %s4154_s28, %s4154_s28 }
  0x1e   :  { %p4161_p0 = por %p4160_p13, %p4159_p12 }
  0x20   :  { %p4162_p1 = pnand %p4161_p0, %p4155_p11 }
  0x22   :  { %4165 = shalt.err (!%p4162_p1)
}
  0x23   :  { %41 = dma.hbm_to_vmem [thread:$0]  %s5069_s3, 512, %s4391_s21, [#allocation6], %s4290_s30, %s4290_s30, %s4291_s16  }
  0x24   :  { %s4292_s29 = smov [#allocation10]   ;;  %s4293_s18 = smov [#allocation11]  }
  0x25   :  { %s67_s17 = sshll.u32 %s4292_s29, 4  ;;  %s81_s20 = sshll.u32 %s4293_s18, 4  ;;  %s68_s17 = int_to_ptr.vmem [resolvable:$true] %s67_s17  ;;  %s4428_s20 = int_to_ptr.vmem [resolvable:$true] %s81_s20 }
  0x26   :  { %s4166_s24 = scalar_lea.hbm %s5075_s9, 512 }
  0x27   :  { %p4167_p2 = scmp.ne.s32.totalorder %s5075_s9, %s4166_s24  ;;  %p4170_p3 = scmp.lt.u32.totalorder %s4166_s24, %s5075_s9 }
  0x29   :  { %p4172_p4 = pnand %p4170_p3, %p4167_p2 }
  0x2b   :  { %4175 = shalt.err (!%p4172_p4)
}
  0x2c   :  { %s4176_s3 = scalar_lea.vmem %s68_s17, 512  ;;  %p4181_p6 = scmp.lt.s32.totalorder %s68_s17, %s68_s17 }
  0x2d   :  { %p4177_p5 = scmp.ne.s32.totalorder %s68_s17, %s4176_s3  ;;  %p4182_p7 = scmp.lt.s32.totalorder %s4176_s3, %s4176_s3 }
  0x2f   :  { %p4183_p8 = por %p4182_p7, %p4181_p6 }
  0x31   :  { %p4184_p9 = pnand %p4183_p8, %p4177_p5 }
  0x33   :  { %4187 = shalt.err (!%p4184_p9)
}
  0x34   :  { %73 = dma.hbm_to_vmem [thread:$0]  %s5075_s9, 512, %s68_s17, [#allocation9], %s4290_s30, %s4290_s30, %s4291_s16  }
  0x35   :  { %s4188_s18 = scalar_lea.hbm %s5077_s11, 512 }
  0x36   :  { %p4189_p10 = scmp.ne.s32.totalorder %s5077_s11, %s4188_s18  ;;  %p4192_p11 = scmp.lt.u32.totalorder %s4188_s18, %s5077_s11 }
  0x38   :  { %p4194_p12 = pnand %p4192_p11, %p4189_p10 }
  0x3a   :  { %4197 = shalt.err (!%p4194_p12)
}
  0x3b   :  { %s4198_s26 = scalar_lea.vmem %s4428_s20, 512  ;;  %p4203_p0 = scmp.lt.s32.totalorder %s4428_s20, %s4428_s20 }
  0x3c   :  { %p4199_p13 = scmp.ne.s32.totalorder %s4428_s20, %s4198_s26  ;;  %p4204_p1 = scmp.lt.s32.totalorder %s4198_s26, %s4198_s26 }
  0x3e   :  { %p4205_p2 = por %p4204_p1, %p4203_p0 }
  0x40   :  { %p4206_p3 = pnand %p4205_p2, %p4199_p13 }
  0x42   :  { %4209 = shalt.err (!%p4206_p3)
}
  0x43   :  { %87 = dma.hbm_to_vmem [thread:$0]  %s5077_s11, 512, %s4428_s20, [#allocation12], %s4290_s30, %s4290_s30, %s4291_s16  }
  0x44   :  { %4256 = dma.done.wait [#allocation6], 512  }
  0x45   :  { %4257 = vsyncadd [#allocation6], 4294966784 }
  0x46   :  { %4258 = dma.done.wait [#allocation9], 1024  }
  0x47   :  { %4259 = vsyncadd [#allocation9], 4294966272 }
  0x48   :  { %4260 = dma.done.wait [#allocation12], 512  }
  0x49   :  { %4261 = vsyncadd [#allocation12], 4294966784  ;;  %v4294_v0 = vmov 0.0   ;;  %v4470_v1 = vld [vmem:[%s5070_s4] ss:$0 sm:$0xff]  ;;  %v4477_v3 = vld [vmem:[#allocation5] sm:$0xff]  ;;  %v108_v21 = vlaneseq }
  0x4a   :  { %211 = vmatprep.mubr.f32.mxu0 %v4294_v0  ;;  %302 = vmatprep.mubr.f32.mxu1 %v4294_v0  ;;  %v4475_v2 = vld [vmem:[%s5072_s6] ss:$0 sm:$0xff]  ;;  %v4479_v4 = vld [vmem:[#allocation5 + $0x8] sm:$0xff]  ;;  %v4483_v6 = vld [vmem:[#allocation5 + $0x18] sm:$0xff]  ;;  %vm143_vm0 = vcmask 64512   ;;  %vm229_vm1 = vcmask 1041408  }
  0x4b   :  { %v4481_v5 = vld [vmem:[#allocation5 + $0x10] sm:$0xff]  ;;  %v4485_v7 = vld [vmem:[#allocation8] sm:$0xff]  ;;  %v4487_v8 = vld [vmem:[#allocation8 + $0x8] sm:$0xff]  ;;  %v4537_v22 = vshrl.u32 %v108_v21, 7  ;;  %v4295_v24 = vmov 1983009808  }
  0x4c   :  { %v4489_v9 = vld [vmem:[#allocation8 + $0x10] sm:$0xff]  ;;  %v4491_v10 = vld [vmem:[#allocation8 + $0x18] sm:$0xff]  ;;  %v222_v25 = vunpack.c.l.s4 %v4295_v24  ;;  %vm230_vm2 = vcmask 519170  }
  0x4d   :  { %v141_v11 = vld [vmem:[%s5067_s1 + $0x8] sm:$0xff]  ;;  %v140_v12 = vld [vmem:[%s5067_s1] sm:$0xff]  ;;  %v110_v23 = vsub.s32 0, %v4537_v22  ;;  %v114_v27 = vsub.s32 1, %v4537_v22  ;;  %vm4551_vm3 = vmor %vm230_vm2, %vm229_vm1 }
  0x4e   :  { %147 = vmatprep.subr.mxu0 %v141_v11  ;;  %238 = vmatprep.subr.mxu1 %v141_v11  ;;  %v142_v13 = vld [vmem:[%s5066_s0] sm:$0x3]  ;;  %v3530_v14 = vld [vmem:[%s5066_s0 + $0x2] sm:$0x3]  ;;  %v3532_v15 = vld [vmem:[%s5066_s0 + $0x4] sm:$0x3]  ;;  %v223_v29 = vunpack.c.0.s8 %v222_v25 }
  0x4f   :  { %148 = vmatpush1.msra.mxu0 %v140_v12  ;;  %239 = vmatpush1.msra.mxu1 %v140_v12  ;;  %v3534_v16 = vld [vmem:[%s5066_s0 + $0x6] sm:$0x3]  ;;  %v3536_v17 = vld [vmem:[%s5066_s0 + $0x8] sm:$0x3]  ;;  %v3538_v18 = vld [vmem:[%s5066_s0 + $0xa] sm:$0x3] }
  0x50   :  { %3529 = vmatmul.mubr.msk.f32.vlgmr.msra.gmra.mrb[0].mxu0 %vm143_vm0, %v142_v13  ;;  %3531 = vmatmul.mubr.msk.f32.vlgmr.msra.gmra.mrb[0].mxu1 %vm143_vm0, %v3530_v14  ;;  %v3540_v19 = vld [vmem:[%s5066_s0 + $0xc] sm:$0x3]  ;;  %v3542_v20 = vld [vmem:[%s5066_s0 + $0xe] sm:$0x3]  ;;  %v106_v26 = vld [vmem:[%s5068_s2] sm:$0x3]  ;;  %v4549_v36 = vsub.s32 %v223_v29, %v4537_v22 }
  0x51   :  { %327 = vmatprep.subr.mxu0 %v141_v11  ;;  %416 = vmatprep.subr.mxu1 %v141_v11  ;;  %v111_v28 = vrot.slane %v106_v26, %v110_v23  ;;  %v115_v30 = vrot.slane %v106_v26, %v114_v27  ;;  %s4583_s0 = smov 0  }
  0x52   :  { %328 = vmatpush1.msra.mxu0 %v140_v12  ;;  %417 = vmatpush1.msra.mxu1 %v140_v12 }
  0x53   :  { %391 = vmatprep.mubr.f32.mxu0 %v4294_v0  ;;  %480 = vmatprep.mubr.f32.mxu1 %v4294_v0 }
  0x54   :  { %3533 = vmatmul.mubr.msk.f32.vlgmr.msra.gmra.mrb[2].mxu0 %vm143_vm0, %v3532_v15  ;;  %3535 = vmatmul.mubr.msk.f32.vlgmr.msra.gmra.mrb[2].mxu1 %vm143_vm0, %v3534_v16 }
  0x55   :  { %505 = vmatprep.subr.mxu0 %v141_v11  ;;  %594 = vmatprep.subr.mxu1 %v141_v11 }
  0x56   :  { %506 = vmatpush1.msra.mxu0 %v140_v12  ;;  %595 = vmatpush1.msra.mxu1 %v140_v12 }
  0x57   :  { %569 = vmatprep.mubr.f32.mxu0 %v4294_v0  ;;  %658 = vmatprep.mubr.f32.mxu1 %v4294_v0 }
  0x58   :  { %3537 = vmatmul.mubr.msk.f32.vlgmr.msra.gmra.mrb[4].mxu0 %vm143_vm0, %v3536_v17  ;;  %3539 = vmatmul.mubr.msk.f32.vlgmr.msra.gmra.mrb[4].mxu1 %vm143_vm0, %v3538_v18 }
  0x59   :  { %683 = vmatprep.subr.mxu0 %v141_v11  ;;  %772 = vmatprep.subr.mxu1 %v141_v11 }
  0x5a   :  { %684 = vmatpush1.msra.mxu0 %v140_v12  ;;  %773 = vmatpush1.msra.mxu1 %v140_v12 }
  0x5b   :  { %747 = vmatprep.mubr.f32.mxu0 %v4294_v0  ;;  %836 = vmatprep.mubr.f32.mxu1 %v4294_v0 }
  0x5c   :  { %3541 = vmatmul.mubr.msk.f32.vlgmr.msra.gmra.mrb[6].mxu0 %vm143_vm0, %v3540_v19  ;;  %3543 = vmatmul.mubr.msk.f32.vlgmr.msra.gmra.mrb[6].mxu1 %vm143_vm0, %v3542_v20 }
 0x123   :  { %v213_v31 = vpop.f32.mrb[0].mxu0  ;;  %v304_v32 = vpop.f32.mrb[0].mxu1 }
 0x124   :  { %v214_v33 = vadd.f32 %v213_v31, %v111_v28  ;;  %v305_v34 = vadd.f32 %v304_v32, %v111_v28  ;;  %v215_v35 = vpop.f32.mrb[1].mxu0  ;;  %v306_v37 = vpop.f32.mrb[1].mxu1  ;;  %v4579_v32 = vmov 0.0  }
 0x125   :  { %v216_v38 = vadd.f32 %v215_v35, %v115_v30  ;;  %v307_v39 = vadd.f32 %v306_v37, %v115_v30 }
 0x127   :  { %v220_v40 = vcombine.low %v214_v33, %v216_v38  ;;  %v311_v41 = vcombine.low %v305_v34, %v307_v39  ;;  %v393_v42 = vpop.f32.mrb[2].mxu0  ;;  %v482_v43 = vpop.f32.mrb[2].mxu1 }
 0x128   :  { %v394_v45 = vadd.f32 %v393_v42, %v111_v28  ;;  %v483_v46 = vadd.f32 %v482_v43, %v111_v28  ;;  %v395_v47 = vpop.f32.mrb[3].mxu0  ;;  %v484_v48 = vpop.f32.mrb[3].mxu1 }
 0x129   :  { %v227_v49 = vrot.slane %v220_v40, %v4549_v36  ;;  %v318_v50 = vrot.slane %v311_v41, %v4549_v36  ;;  %v396_v51 = vadd.f32 %v395_v47, %v115_v30  ;;  %v485_v52 = vadd.f32 %v484_v48, %v115_v30 }
 0x12b   :  { %232 = vst.msk [vmem:[#allocation2] sm:$0xf] %vm4551_vm3, %v227_v49  ;;  %321 = vst.msk [vmem:[#allocation2 + $0x4] sm:$0xf] %vm4551_vm3, %v318_v50  ;;  %v400_v53 = vcombine.low %v394_v45, %v396_v51  ;;  %v489_v54 = vcombine.low %v483_v46, %v485_v52  ;;  %v571_v55 = vpop.f32.mrb[4].mxu0  ;;  %v660_v56 = vpop.f32.mrb[4].mxu1 }
 0x12c   :  { %v572_v57 = vadd.f32 %v571_v55, %v111_v28  ;;  %v661_v58 = vadd.f32 %v660_v56, %v111_v28  ;;  %v573_v59 = vpop.f32.mrb[5].mxu0  ;;  %v662_v60 = vpop.f32.mrb[5].mxu1 }
 0x12d   :  { %v407_v61 = vrot.slane %v400_v53, %v4549_v36  ;;  %v496_v62 = vrot.slane %v489_v54, %v4549_v36  ;;  %v574_v63 = vadd.f32 %v573_v59, %v115_v30  ;;  %v663_v11 = vadd.f32 %v662_v60, %v115_v30 }
 0x12f   :  { %410 = vst.msk [vmem:[#allocation2 + $0x8] sm:$0xf] %vm4551_vm3, %v407_v61  ;;  %499 = vst.msk [vmem:[#allocation2 + $0xc] sm:$0xf] %vm4551_vm3, %v496_v62  ;;  %v578_v12 = vcombine.low %v572_v57, %v574_v63  ;;  %v667_v13 = vcombine.low %v661_v58, %v663_v11  ;;  %v749_v14 = vpop.f32.mrb[6].mxu0  ;;  %v838_v15 = vpop.f32.mrb[6].mxu1 }
 0x130   :  { %v750_v16 = vadd.f32 %v749_v14, %v111_v28  ;;  %v839_v17 = vadd.f32 %v838_v15, %v111_v28  ;;  %v751_v18 = vpop.f32.mrb[7].mxu0  ;;  %v840_v19 = vpop.f32.mrb[7].mxu1 }
 0x131   :  { %v585_v20 = vrot.slane %v578_v12, %v4549_v36  ;;  %v674_v21 = vrot.slane %v667_v13, %v4549_v36  ;;  %v752_v24 = vadd.f32 %v751_v18, %v115_v30  ;;  %v841_v25 = vadd.f32 %v840_v19, %v115_v30 }
 0x132   :  { %v4581_v30 = vmov 0.0  }
 0x133   :  { %588 = vst.msk [vmem:[#allocation2 + $0x10] sm:$0xf] %vm4551_vm3, %v585_v20  ;;  %677 = vst.msk [vmem:[#allocation2 + $0x14] sm:$0xf] %vm4551_vm3, %v674_v21  ;;  %v756_v26 = vcombine.low %v750_v16, %v752_v24  ;;  %v845_v29 = vcombine.low %v839_v17, %v841_v25 }
 0x135   :  { %v763_v31 = vrot.slane %v756_v26, %v4549_v36  ;;  %v852_v28 = vrot.slane %v845_v29, %v4549_v36 }
 0x137   :  { %766 = vst.msk [vmem:[#allocation2 + $0x18] sm:$0xf] %vm4551_vm3, %v763_v31  ;;  %855 = vst.msk [vmem:[#allocation2 + $0x1c] sm:$0xf] %vm4551_vm3, %v852_v28 }
 0x138 LB: > { %v3784_v33 = vpack.c.bf16 %v4479_v4, %v4477_v3  ;;  %v4296_v34 = vmov 0.0|0.0   ;;  %v881_v35 = vrot.slane %v4270_v30, %v4549_v36  ;;  %v3787_v37 = vpack.c.bf16 %v4483_v6, %v4481_v5  ;;  %s4299_s2 = smov 96   ;;  %s4300_s4 = smov 64   ;;  %s4274_s0 = sphi %s4583_s0, %s861_s0   ;;  %v4270_v30 = vphi %v4581_v30, %v5087_v30   ;;  %v4266_v32 = vphi %v4579_v32, %v5086_v32  }
 0x139   : > { %3783 = vmatprep.subr.bf16.mxu0 %v4296_v34  ;;  %3789 = vmatprep.subr.bf16.mxu1 %v4296_v34  ;;  %vm4297_vm4 = vmmov 0   ;;  %v4298_v38 = vmov 0.0   ;;  %vm884_vm5 = vcmask 261120   ;;  %v3790_v40 = vpack.c.bf16 %v4487_v8, %v4485_v7  ;;  %s3612_s11 = sshll.u32 %s4274_s0, 3  ;;  %s4301_s30 = smov 32  }
 0x13a   : > { %3785 = vmatpush3.bf16.msra.mxu0 %v3784_v33  ;;  %3681 = vmatprep.mubr.msk.f32.mxu0 %vm4297_vm4, %v4298_v38  ;;  %v3793_v41 = vpack.c.bf16 %v4491_v10, %v4489_v9  ;;  %s4616_s6 = scalar_lea.vmem [#allocation2], %s3612_s11  ;;  %s3544_s16 = sshll.u32 %s4274_s0, 1  ;;  %vm1121_vm6 = vcmask 254976  }
 0x13b   : > { %3786 = vmatprep.subr.bf16.mxu0 %v4296_v34  ;;  %3692 = vmatprep.mubr.msk.f32.mxu1 %vm4297_vm4, %v4298_v38  ;;  %s4627_s20 = ssub.s32 7, %s3544_s16  ;;  %s3611_s1 = sshll.u32 %s4274_s0, 2 }
 0x13c   : > { %882 = vrot.lane.b32.xlu0 %v881_v35, %s4299_s2  ;;  %3791 = vmatpush3.bf16.msra.mxu1 %v3790_v40  ;;  %s3613_s5 = sshll.u32 %s4627_s20, 2  ;;  %s4640_s29 = scalar_lea.vmem [#allocation3], %s3611_s1 }
 0x13d   : > { %3792 = vmatprep.subr.bf16.mxu1 %v4296_v34  ;;  %s872_s19 = scalar_lea.vmem [#allocation2], %s3613_s5  ;;  %s3547_s18 = sshll.u32 %s4627_s20, 1 }
 0x13e   : > { %3788 = vmatpush3.bf16.msra.mxu0 %v3787_v37  ;;  %v869_v47 = vld [vmem:[%s4616_s6] sm:$0xf]  ;;  %s1123_s22 = scalar_lea.vmem [#allocation4], %s3547_s18  ;;  %s4662_s23 = ssub.s32 6, %s3544_s16 }
 0x13f   : > { %3795 = vmatprep.subr.bf16.mxu0 %v4296_v34  ;;  %v873_v59 = vld [vmem:[%s872_s19] sm:$0xf]  ;;  %s3615_s24 = sshll.u32 %s4662_s23, 2  ;;  %s3557_s26 = sshll.u32 %s4662_s23, 1 }
 0x140   : > { %3794 = vmatpush3.bf16.msra.mxu1 %v3793_v41  ;;  %v1082_v26 = vrot.slane %v873_v59, 2  ;;  %s1133_s25 = scalar_lea.vmem [#allocation2], %s3615_s24  ;;  %s1372_s9 = scalar_lea.vmem [#allocation4], %s3557_s26 }
 0x141   : > { %3801 = vmatprep.subr.bf16.mxu1 %v4296_v34  ;;  %s861_s0 = sadd.s32 1, %s4274_s0  }
 0x142   : > { %p858_p4 = scmp.ge.s32.totalorder %s861_s0, 4  }
 0x143   : > { %3693 = vmatmul.mubr.msk.f32.vlgmr.msra.gmra.mrb[0].mxu1 %vm884_vm5, %v4266_v32  ;;  %v4715_v3 = vld [vmem:[#allocation11 + $0x8] sm:$0xff] (%p858_p4)  ;;  %v4717_v4 = vld [vmem:[#allocation11 + $0x10] sm:$0xff] (%p858_p4)  ;;  %v4719_v5 = vld [vmem:[#allocation11 + $0x18] sm:$0xff] (%p858_p4) }
 0x144   : > { %3803 = vmatpush3.bf16.msra.mxu1 %v3790_v40  ;;  %3714 = vmatprep.mubr.msk.f32.mxu1 %vm4297_vm4, %v4298_v38  ;;  %v1417_v6 = vld [vmem:[%s5073_s7 + $0x48] sm:$0xff] (%p858_p4)  ;;  %v1419_v7 = vld [vmem:[%s5073_s7 + $0x58] sm:$0xff] (%p858_p4)  ;;  %v1416_v9 = vld [vmem:[%s5073_s7 + $0x40] sm:$0xff] (%p858_p4) }
 0x145   : > { %3804 = vmatprep.subr.bf16.mxu1 %v4296_v34  ;;  %v4727_v8 = vpack.c.bf16 (%p858_p4), %v1419_v7, %v1417_v6  ;;  %v1418_v10 = vld [vmem:[%s5073_s7 + $0x50] sm:$0xff] (%p858_p4) }
 0x148   : > { %3806 = vmatpush3.bf16.msra.mxu1 %v3793_v41 }
 0x149   :  { %3824 = vmatprep.subr.bf16.mxu1 (%p858_p4), %v4727_v8 }
 0x1ae   : > { %v883_v39 = vpop.permute.xlu0 %882 }
 0x1af   : > { %3682 = vmatmul.mubr.msk.f32.vlgmr.msra.gmra.mrb[0].mxu0 %vm884_vm5, %v883_v39 }
 0x1b0   : > { %3797 = vmatpush3.bf16.msra.mxu0 %v3784_v33  ;;  %3703 = vmatprep.mubr.msk.f32.mxu0 %vm4297_vm4, %v4298_v38 }
 0x1b1   : > { %3798 = vmatprep.subr.bf16.mxu0 %v4296_v34 }
 0x1b4   : > { %3800 = vmatpush3.bf16.msra.mxu0 %v3787_v37 }
 0x1b5   :  { %3808 = vmatprep.subr.bf16.mxu0 (%p858_p4), %v4727_v8 }
 0x216   : > { %v1026_v50 = vpop.f32.mrb[0].mxu1 }
 0x217   : > { %v1027_v51 = vadd.f32 %v4475_v2, %v1026_v50  ;;  %v3694_v52 = vpop.f32.mrb[1].mxu1 }
 0x219   : > { %v1070_v54 = vrot.slane %v1027_v51, %v4549_v36 }
 0x282   : > { %v953_v42 = vpop.f32.mrb[0].mxu0 }
 0x283   : > { %v954_v43 = vadd.f32 %v4470_v1, %v953_v42  ;;  %v3683_v45 = vpop.f32.mrb[1].mxu0 }
 0x285   : > { %v1044_v46 = vrot.slane %v954_v43, %v4549_v36  ;;  %v1030_v48 = vadd.f32 %v954_v43, %v869_v47 }
 0x287   : > { %1045 = vrot.lane.b32.xlu0 %v1044_v46, %s4300_s4  ;;  %v3551_v49 = vmul.f32 -1.442695, %v1030_v48 }
 0x289   : > { %4058 = vpow2.f32 %v3551_v49 }
 0x28b   : > { %1071 = vrot.lane.b32.xlu0 %v1070_v54, %s4299_s2 }
 0x28f   : > { %1091 = vrot.lane.b32.xlu0 %v1070_v54, %s4301_s30 }
 0x293   : > { %v4059_v53 = vpop.eup %4058 }
 0x294   : > { %v1034_v55 = vadd.f32 1.0, %v4059_v53  ;;  %v3556_v53 = vld [vmem:[%s4616_s6 + $0x4] sm:$0xf] }
 0x296   : > { %4060 = vrcp.f32 %v1034_v55 }
 0x2a0   : > { %v4061_v56 = vpop.eup %4060 }
 0x2a1   : > { %v1055_v18 = vsub.f32 1.0, %v4061_v56  ;;  %v1061_v20 = vmul.f32 %v4270_v30, %v4061_v56 }
 0x2f9   : > { %v1046_v57 = vpop.permute.xlu0 %1045 }
 0x2fa   : > { %v1048_v58 = vmul.f32 %v4061_v56, %v1046_v57 }
 0x2fc   : > { %1050 = vrot.lane.b32.xlu1 %v1048_v58, %s4300_s4 }
 0x2fd   : > { %v1072_v60 = vpop.permute.xlu0 %1071 }
 0x2fe   : > { %v1074_v61 = vadd.f32 %v1072_v60, %v873_v59  ;;  %v1084_v29 = vadd.f32 %v1082_v26, %v1072_v60 }
 0x300   : > { %v3552_v62 = vmul.f32 -1.442695, %v1074_v61  ;;  %v3553_v31 = vmul.f32 -1.442695, %v1084_v29  ;;  %v1134_v61 = vld [vmem:[%s1133_s25] sm:$0xf] }
 0x301   : > { %v1092_v14 = vpop.permute.xlu0 %1091 }
 0x302   : > { %4062 = vpow2.f32 %v3552_v62 }
 0x30c   : > { %v4063_v63 = vpop.eup %4062 }
 0x30d   : > { %v1078_v11 = vadd.f32 1.0, %v4063_v63 }
 0x30f   : > { %4064 = vrcp.f32 %v1078_v11 }
 0x319   : > { %v4065_v15 = vpop.eup %4064 }
 0x31a   : > { %v1094_v16 = vmul.f32 %v4065_v15, %v1092_v14 }
 0x31c   : > { %1100 = vrot.lane.b32.xlu0 %v1094_v16, %s4301_s30 }
 0x36e   : > { %v1051_v12 = vpop.permute.xlu1 %1050 }
 0x36f   : > { %v1053_v13 = vadd.f32 %v1051_v12, %v869_v47 }
 0x371   : > { %4066 = vtanh.f32 %v1053_v13 }
 0x372   : > { %4068 = vpow2.f32 %v3553_v31 }
 0x37b   : > { %v4067_v17 = vpop.eup %4066 }
 0x37c   : > { %1057 = vrot.lane.b32.xlu1 %v4067_v17, %s4299_s2  ;;  %v4069_v28 = vpop.eup %4068 }
 0x37d   : > { %v1088_v33 = vadd.f32 1.0, %v4069_v28 }
 0x37f   : > { %4070 = vrcp.f32 %v1088_v33 }
 0x389   : > { %v4071_v39 = vpop.eup %4070 }
 0x38a   : > { %v1105_v40 = vsub.f32 1.0, %v4071_v39  ;;  %v1107_v41 = vmul.f32 %v4266_v32, %v4071_v39 }
 0x38e   : > { %v1101_v35 = vpop.permute.xlu0 %1100 }
 0x3ee   : > { %v1058_v19 = vpop.permute.xlu1 %1057 }
 0x3ef   : > { %v1060_v21 = vmul.f32 %v1058_v19, %v1055_v18 }
 0x3f1   : > { %v4633_v24 = vadd.f32 %v1061_v20, %v1060_v21  ;;  %v1332_v20 = vrot.slane %v1134_v61, 2 }
 0x3f3   : > { %v1116_v25 = vrot.slane %v4633_v24, %v4549_v36 }
 0x3f5   : > { %1117 = vrot.lane.b32.xlu1 %v1116_v25, %s4299_s2 }
 0x3f9   : > { %1095 = vrot.lane.b32.xlu1 %v873_v59, %s4299_s2 }
 0x467   : > { %v1118_v30 = vpop.permute.xlu1 %1117 }
 0x468   : > { %1122 = vst.msk [vmem:[%s4640_s29] sm:$0x3] %vm1121_vm6, %v1118_v30  ;;  %3704 = vmatmul.mubr.msk.f32.vlgmr.msra.gmra.mrb[2].mxu0 %vm884_vm5, %v1118_v30 }
 0x469   :  { %1494 = vmatprep.mubr.f32.mxu0 (%p858_p4), %v4294_v0 }
 0x46b   : > { %v1096_v34 = vpop.permute.xlu1 %1095 }
 0x46c   : > { %v1097_v37 = vrot.slane %v1096_v34, 2 }
 0x46e   : > { %v1103_v38 = vadd.f32 %v1101_v35, %v1097_v37 }
 0x470   : > { %4072 = vtanh.f32 %v1103_v38 }
 0x47a   : > { %v4073_v42 = vpop.eup %4072 }
 0x47b   : > { %v1106_v43 = vmul.f32 %v4073_v42, %v1105_v40 }
 0x47d   : > { %v4647_v45 = vadd.f32 %v1107_v41, %v1106_v43 }
 0x47f   : > { %1124 = vst.msk [vmem:[%s1123_s22] sm:$0x3] %vm1121_vm6, %v4647_v45  ;;  %3715 = vmatmul.mubr.msk.f32.vlgmr.msra.gmra.mrb[2].mxu1 %vm884_vm5, %v4647_v45 }
 0x480   :  { %1660 = vmatprep.mubr.f32.mxu1 (%p858_p4), %v4294_v0 }
 0x53b   : > { %v1203_v46 = vpop.f32.mrb[2].mxu0 }
 0x53c   : > { %v1204_v47 = vadd.f32 %v4470_v1, %v1203_v46  ;;  %v3705_v48 = vpop.f32.mrb[3].mxu0  ;;  %v4711_v1 = vld [vmem:[#allocation10 + $0x18] sm:$0xff] (%p858_p4) }
 0x53e   : > { %v1294_v49 = vrot.slane %v1204_v47, %v4549_v36  ;;  %v1280_v54 = vadd.f32 %v3556_v53, %v1204_v47 }
 0x540   : > { %1295 = vrot.lane.b32.xlu1 %v1294_v49, %s4300_s4  ;;  %v3561_v55 = vmul.f32 -1.442695, %v1280_v54  ;;  %v4701_v49 = vld [vmem:[%s5078_s12] ss:$0 sm:$0xff] (%p858_p4)  ;;  %v1423_v54 = vld [vmem:[%s5073_s7 + $0x78] sm:$0xff] (%p858_p4) }
 0x542   : > { %4074 = vpow2.f32 %v3561_v55  ;;  %v1420_v55 = vld [vmem:[%s5073_s7 + $0x60] sm:$0xff] (%p858_p4) }
 0x54c   : > { %v4075_v56 = vpop.eup %4074 }
 0x54d   : > { %v1284_v57 = vadd.f32 1.0, %v4075_v56  ;;  %v1422_v56 = vld [vmem:[%s5073_s7 + $0x70] sm:$0xff] (%p858_p4) }
 0x54f   : > { %4076 = vrcp.f32 %v1284_v57 }
 0x552   : > { %v1276_v32 = vpop.f32.mrb[2].mxu1 }
 0x553   : > { %v1277_v50 = vadd.f32 %v4475_v2, %v1276_v32  ;;  %v3716_v51 = vpop.f32.mrb[3].mxu1  ;;  %v4713_v2 = vld [vmem:[#allocation11] sm:$0xff] (%p858_p4) }
 0x554   :  { %v4707_v51 = vld [vmem:[#allocation10 + $0x8] sm:$0xff] (%p858_p4) }
 0x555   : > { %v1320_v52 = vrot.slane %v1277_v50, %v4549_v36  ;;  %v4703_v50 = vld [vmem:[#allocation10] sm:$0xff] (%p858_p4) }
 0x557   : > { %1321 = vrot.lane.b32.xlu1 %v1320_v52, %s4299_s2 }
 0x559   : > { %v4077_v58 = vpop.eup %4076 }
 0x55a   : > { %v1305_v31 = vsub.f32 1.0, %v4077_v58  ;;  %v1311_v30 = vmul.f32 %v4077_v58, %v4633_v24 }
 0x5b2   : > { %v1296_v59 = vpop.permute.xlu1 %1295 }
 0x5b3   : > { %v1298_v60 = vmul.f32 %v4077_v58, %v1296_v59  ;;  %v1409_v58 = vld [vmem:[%s5073_s7 + $0x8] sm:$0xff] (%p858_p4)  ;;  %v1411_v59 = vld [vmem:[%s5073_s7 + $0x18] sm:$0xff] (%p858_p4) }
 0x5b5   : > { %1300 = vrot.lane.b32.xlu0 %v1298_v60, %s4300_s4  ;;  %v4761_v60 = vpack.c.bf16 (%p858_p4), %v1422_v56, %v1420_v55 }
 0x5b9   : > { %1341 = vrot.lane.b32.xlu0 %v1320_v52, %s4301_s30  ;;  %v4709_v52 = vld [vmem:[#allocation10 + $0x10] sm:$0xff] (%p858_p4) }
 0x5bd   : > { %1345 = vrot.lane.b32.xlu0 %v1134_v61, %s4299_s2 }
 0x5c9   : > { %v1322_v62 = vpop.permute.xlu1 %1321 }
 0x5ca   : > { %v1324_v63 = vadd.f32 %v1322_v62, %v1134_v61  ;;  %v1334_v21 = vadd.f32 %v1332_v20, %v1322_v62  ;;  %v4765_v61 = vpack.c.bf16 (%p858_p4), %v1411_v59, %v1409_v58  ;;  %v1408_v62 = vld [vmem:[%s5073_s7] sm:$0xff] (%p858_p4) }
 0x5cc   : > { %v3562_v11 = vmul.f32 -1.442695, %v1324_v63  ;;  %v3563_v25 = vmul.f32 -1.442695, %v1334_v21  ;;  %v1410_v63 = vld [vmem:[%s5073_s7 + $0x10] sm:$0xff] (%p858_p4) }
 0x5ce   : > { %4078 = vpow2.f32 %v3562_v11  ;;  %v1413_v11 = vld [vmem:[%s5073_s7 + $0x28] sm:$0xff] (%p858_p4) }
 0x5d8   : > { %v4079_v12 = vpop.eup %4078 }
 0x5d9   : > { %v1328_v14 = vadd.f32 1.0, %v4079_v12  ;;  %v1415_v12 = vld [vmem:[%s5073_s7 + $0x38] sm:$0xff] (%p858_p4) }
 0x627   : > { %v1301_v13 = vpop.permute.xlu0 %1300 }
 0x628   : > { %v1303_v15 = vadd.f32 %v3556_v53, %v1301_v13  ;;  %v4738_v53 = vpack.c.bf16 (%p858_p4), %v1418_v10, %v1416_v9 }
 0x62a   : > { %4080 = vtanh.f32 %v1303_v15  ;;  %3810 = vmatpush1.bf16.msra.mxu0 (%p858_p4), %v4738_v53  ;;  %3826 = vmatpush1.bf16.msra.mxu1 (%p858_p4), %v4738_v53  ;;  %v4781_v15 = vpack.c.bf16 (%p858_p4), %v1410_v63, %v1408_v62 }
 0x62b   : > { %4082 = vrcp.f32 %v1328_v14  ;;  %v1342_v17 = vpop.permute.xlu0 %1341 }
 0x62c   : > { %4084 = vpow2.f32 %v3563_v25 }
 0x62f   : > { %v1346_v29 = vpop.permute.xlu0 %1345 }
 0x630   : > { %v1347_v35 = vrot.slane %v1346_v29, 2 }
 0x634   : > { %v4081_v16 = vpop.eup %4080 }
 0x635   : > { %1307 = vrot.lane.b32.xlu1 %v4081_v16, %s4299_s2  ;;  %v4083_v18 = vpop.eup %4082  ;;  %v4785_v16 = vpack.c.bf16 (%p858_p4), %v1415_v12, %v1413_v11 }
 0x636   : > { %v1344_v19 = vmul.f32 %v4083_v18, %v1342_v17  ;;  %v4085_v26 = vpop.eup %4084  ;;  %v1412_v17 = vld [vmem:[%s5073_s7 + $0x20] sm:$0xff] (%p858_p4)  ;;  %v1414_v18 = vld [vmem:[%s5073_s7 + $0x30] sm:$0xff] (%p858_p4) }
 0x637   : > { %v1338_v33 = vadd.f32 1.0, %v4085_v26 }
 0x639   : > { %1350 = vrot.lane.b32.xlu1 %v1344_v19, %s4301_s30  ;;  %4086 = vrcp.f32 %v1338_v33  ;;  %v4797_v19 = vpack.c.bf16 (%p858_p4), %v1414_v18, %v1412_v17 }
 0x643   : > { %v4087_v41 = vpop.eup %4086 }
 0x644   : > { %v1355_v42 = vsub.f32 1.0, %v4087_v41  ;;  %v1357_v24 = vmul.f32 %v4087_v41, %v4647_v45  ;;  %v4696_v45 = vld [vmem:[%s5076_s10] ss:$0 sm:$0xff] (%p858_p4) }
 0x645   :  { %v1374_v41 = vld [vmem:[%s5074_s8] sm:$0x3] (%p858_p4)  ;;  %s4916_s8 = smov (%p858_p4), 0  }
 0x6a7   : > { %v1308_v28 = vpop.permute.xlu1 %1307 }
 0x6a8   : > { %v1310_v34 = vmul.f32 %v1308_v28, %v1305_v31 }
 0x6aa   : > { %v4671_v30 = vadd.f32 %v1311_v30, %v1310_v34  }
 0x6ab   : > { %v1351_v38 = vpop.permute.xlu1 %1350 }
 0x6ac   : > { %v5084_v37 = vmov %v4671_v30  ;;  %v1353_v40 = vadd.f32 %v1351_v38, %v1347_v35 }
 0x6ad   : > { %v1366_v39 = vrot.slane %v5084_v37, %v4549_v36  ;;  %v5087_v30 = vmov %v5084_v37 }
 0x6ae   : > { %4088 = vtanh.f32 %v1353_v40 }
 0x6af   : > { %1367 = vrot.lane.b32.xlu0 %v1366_v39, %s4299_s2 }
 0x6b8   : > { %v4089_v43 = vpop.eup %4088 }
 0x6b9   : > { %v1356_v46 = vmul.f32 %v4089_v43, %v1355_v42  ;;  %v1379_v42 = vrot.slane (%p858_p4), %v1374_v41, %v110_v23  ;;  %v1383_v43 = vrot.slane (%p858_p4), %v1374_v41, %v114_v27 }
 0x6bb   : > { %v4678_v32 = vadd.f32 %v1357_v24, %v1356_v46  }
 0x6bd   : > { %v5085_v47 = vmov %v4678_v32 }
 0x6be   : > { %1373 = vst.msk [vmem:[%s1372_s9] sm:$0x3] %vm1121_vm6, %v5085_v47  ;;  %v5086_v32 = vmov %v5085_v47 }
 0x6bf   :  { %v1421_v32 = vld [vmem:[%s5073_s7 + $0x68] sm:$0xff] (%p858_p4) }
 0x6c0   :  { %v4751_v57 = vpack.c.bf16 (%p858_p4), %v1423_v54, %v1421_v32 }
 0x6c2   :  { %3812 = vmatprep.subr.bf16.mxu0 (%p858_p4), %v4751_v57  ;;  %3828 = vmatprep.subr.bf16.mxu1 (%p858_p4), %v4751_v57 }
 0x6c3   :  { %3814 = vmatpush1.bf16.msra.mxu0 (%p858_p4), %v4761_v60  ;;  %3830 = vmatpush1.bf16.msra.mxu1 (%p858_p4), %v4761_v60 }
 0x6c4   :  { %3816 = vmatprep.subr.bf16.mxu0 (%p858_p4), %v4765_v61  ;;  %3832 = vmatprep.subr.bf16.mxu1 (%p858_p4), %v4765_v61 }
 0x6c5   :  { %v1425_v13 = vld [vmem:[#allocation4] sm:$0x3] (%p858_p4)  ;;  %v1592_v14 = vld [vmem:[#allocation4 + $0x2] sm:$0x3] (%p858_p4)  ;;  %v1758_v25 = vld [vmem:[#allocation4 + $0x4] sm:$0x3] (%p858_p4) }
 0x6c6   :  { %3569 = vmatmul.mubr.msk.f32.vlgmr.msra.gmra.mrb[0].mxu0 (%p858_p4), %vm884_vm5, %v1425_v13  ;;  %3571 = vmatmul.mubr.msk.f32.vlgmr.msra.gmra.mrb[0].mxu1 (%p858_p4), %vm884_vm5, %v1592_v14  ;;  %v1924_v26 = vld [vmem:[#allocation4 + $0x6] sm:$0x3] (%p858_p4)  ;;  %v2090_v28 = vld [vmem:[#allocation4 + $0x8] sm:$0x3] (%p858_p4)  ;;  %v2256_v33 = vld [vmem:[#allocation4 + $0xa] sm:$0x3] (%p858_p4) }
 0x6c7   :  { %3818 = vmatpush1.bf16.msra.mxu0 (%p858_p4), %v4781_v15  ;;  %3834 = vmatpush1.bf16.msra.mxu1 (%p858_p4), %v4781_v15  ;;  %v2422_v35 = vld [vmem:[#allocation4 + $0xc] sm:$0x3] (%p858_p4)  ;;  %v2588_v38 = vld [vmem:[#allocation4 + $0xe] sm:$0x3] (%p858_p4) }
 0x6c8   :  { %3820 = vmatprep.subr.bf16.mxu0 (%p858_p4), %v4785_v16  ;;  %3836 = vmatprep.subr.bf16.mxu1 (%p858_p4), %v4785_v16 }
 0x6c9   :  { %1568 = vmatprep.mubr.f32.mxu0 (%p858_p4), %v4294_v0  ;;  %1734 = vmatprep.mubr.f32.mxu1 (%p858_p4), %v4294_v0 }
 0x6cb   :  { %3822 = vmatpush1.bf16.msra.mxu0 (%p858_p4), %v4797_v19  ;;  %3838 = vmatpush1.bf16.msra.mxu1 (%p858_p4), %v4797_v19 }
 0x6cc   :  { %3840 = vmatprep.subr.bf16.mxu0 (%p858_p4), %v4727_v8  ;;  %3856 = vmatprep.subr.bf16.mxu1 (%p858_p4), %v4727_v8 }
 0x71c   :  { %860 = sbr.rel (!%p858_p4) target bundleno = 312 (0x138), region = 154 }
 0x721   : > { %v1368_v48 = vpop.permute.xlu0 %1367 }
 0x722   : > { %3566 = vst.msk [vmem:[%s4640_s29 + $0x2] sm:$0x3] %vm1121_vm6, %v1368_v48 }
 0x729   :  { %v1424_v20 = vld [vmem:[#allocation3] sm:$0x3]  ;;  %v1590_v21 = vld [vmem:[#allocation3 + $0x2] sm:$0x3]  ;;  %v1756_v29 = vld [vmem:[#allocation3 + $0x4] sm:$0x3] }
 0x72a   :  { %3570 = vmatmul.mubr.msk.f32.vlgmr.msra.gmra.mrb[0].mxu0 %vm884_vm5, %v1424_v20  ;;  %3572 = vmatmul.mubr.msk.f32.vlgmr.msra.gmra.mrb[0].mxu1 %vm884_vm5, %v1590_v21  ;;  %v1922_v31 = vld [vmem:[#allocation3 + $0x6] sm:$0x3]  ;;  %v2088_v30 = vld [vmem:[#allocation3 + $0x8] sm:$0x3]  ;;  %v2254_v34 = vld [vmem:[#allocation3 + $0xa] sm:$0x3] }
 0x72b   :  { %3842 = vmatpush1.bf16.msra.mxu0 %v4738_v53  ;;  %3858 = vmatpush1.bf16.msra.mxu1 %v4738_v53  ;;  %v2420_v39 = vld [vmem:[#allocation3 + $0xc] sm:$0x3]  ;;  %v2586_v40 = vld [vmem:[#allocation3 + $0xe] sm:$0x3] }
 0x72c   :  { %3844 = vmatprep.subr.bf16.mxu0 %v4751_v57  ;;  %3860 = vmatprep.subr.bf16.mxu1 %v4751_v57 }
 0x72d   :  { %1826 = vmatprep.mubr.f32.mxu0 %v4294_v0  ;;  %1992 = vmatprep.mubr.f32.mxu1 %v4294_v0 }
 0x72f   :  { %3846 = vmatpush1.bf16.msra.mxu0 %v4761_v60  ;;  %3862 = vmatpush1.bf16.msra.mxu1 %v4761_v60 }
 0x730   :  { %3848 = vmatprep.subr.bf16.mxu0 %v4765_v61  ;;  %3864 = vmatprep.subr.bf16.mxu1 %v4765_v61 }
 0x732   :  { %3573 = vmatmul.mubr.msk.f32.vlgmr.msra.gmra.mrb[2].mxu0 %vm884_vm5, %v1758_v25  ;;  %3575 = vmatmul.mubr.msk.f32.vlgmr.msra.gmra.mrb[2].mxu1 %vm884_vm5, %v1924_v26 }
 0x733   :  { %3850 = vmatpush1.bf16.msra.mxu0 %v4781_v15  ;;  %3866 = vmatpush1.bf16.msra.mxu1 %v4781_v15 }
 0x734   :  { %3852 = vmatprep.subr.bf16.mxu0 %v4785_v16  ;;  %3868 = vmatprep.subr.bf16.mxu1 %v4785_v16 }
 0x735   :  { %1900 = vmatprep.mubr.f32.mxu0 %v4294_v0  ;;  %2066 = vmatprep.mubr.f32.mxu1 %v4294_v0 }
 0x737   :  { %3854 = vmatpush1.bf16.msra.mxu0 %v4797_v19  ;;  %3870 = vmatpush1.bf16.msra.mxu1 %v4797_v19 }
 0x738   :  { %3872 = vmatprep.subr.bf16.mxu0 %v4727_v8  ;;  %3888 = vmatprep.subr.bf16.mxu1 %v4727_v8 }
 0x73a   :  { %3574 = vmatmul.mubr.msk.f32.vlgmr.msra.gmra.mrb[2].mxu0 %vm884_vm5, %v1756_v29  ;;  %3576 = vmatmul.mubr.msk.f32.vlgmr.msra.gmra.mrb[2].mxu1 %vm884_vm5, %v1922_v31 }
 0x73b   :  { %3874 = vmatpush1.bf16.msra.mxu0 %v4738_v53  ;;  %3890 = vmatpush1.bf16.msra.mxu1 %v4738_v53 }
 0x73c   :  { %3876 = vmatprep.subr.bf16.mxu0 %v4751_v57  ;;  %3892 = vmatprep.subr.bf16.mxu1 %v4751_v57 }
 0x73d   :  { %2158 = vmatprep.mubr.f32.mxu0 %v4294_v0  ;;  %2324 = vmatprep.mubr.f32.mxu1 %v4294_v0 }
 0x73f   :  { %3878 = vmatpush1.bf16.msra.mxu0 %v4761_v60  ;;  %3894 = vmatpush1.bf16.msra.mxu1 %v4761_v60 }
 0x740   :  { %3880 = vmatprep.subr.bf16.mxu0 %v4765_v61  ;;  %3896 = vmatprep.subr.bf16.mxu1 %v4765_v61 }
 0x742   :  { %3577 = vmatmul.mubr.msk.f32.vlgmr.msra.gmra.mrb[4].mxu0 %vm884_vm5, %v2090_v28  ;;  %3579 = vmatmul.mubr.msk.f32.vlgmr.msra.gmra.mrb[4].mxu1 %vm884_vm5, %v2256_v33 }
 0x743   :  { %3882 = vmatpush1.bf16.msra.mxu0 %v4781_v15  ;;  %3898 = vmatpush1.bf16.msra.mxu1 %v4781_v15 }
 0x744   :  { %3884 = vmatprep.subr.bf16.mxu0 %v4785_v16  ;;  %3900 = vmatprep.subr.bf16.mxu1 %v4785_v16 }
 0x745   :  { %2232 = vmatprep.mubr.f32.mxu0 %v4294_v0  ;;  %2398 = vmatprep.mubr.f32.mxu1 %v4294_v0 }
 0x747   :  { %3886 = vmatpush1.bf16.msra.mxu0 %v4797_v19  ;;  %3902 = vmatpush1.bf16.msra.mxu1 %v4797_v19 }
 0x748   :  { %3904 = vmatprep.subr.bf16.mxu0 %v4727_v8  ;;  %3920 = vmatprep.subr.bf16.mxu1 %v4727_v8 }
 0x74a   :  { %3578 = vmatmul.mubr.msk.f32.vlgmr.msra.gmra.mrb[4].mxu0 %vm884_vm5, %v2088_v30  ;;  %3580 = vmatmul.mubr.msk.f32.vlgmr.msra.gmra.mrb[4].mxu1 %vm884_vm5, %v2254_v34 }
 0x74b   :  { %3906 = vmatpush1.bf16.msra.mxu0 %v4738_v53  ;;  %3922 = vmatpush1.bf16.msra.mxu1 %v4738_v53 }
 0x74c   :  { %3908 = vmatprep.subr.bf16.mxu0 %v4751_v57  ;;  %3924 = vmatprep.subr.bf16.mxu1 %v4751_v57 }
 0x74d   :  { %2490 = vmatprep.mubr.f32.mxu0 %v4294_v0  ;;  %2656 = vmatprep.mubr.f32.mxu1 %v4294_v0 }
 0x74f   :  { %3910 = vmatpush1.bf16.msra.mxu0 %v4761_v60  ;;  %3926 = vmatpush1.bf16.msra.mxu1 %v4761_v60 }
 0x750   :  { %3912 = vmatprep.subr.bf16.mxu0 %v4765_v61  ;;  %3928 = vmatprep.subr.bf16.mxu1 %v4765_v61 }
 0x752   :  { %3581 = vmatmul.mubr.msk.f32.vlgmr.msra.gmra.mrb[6].mxu0 %vm884_vm5, %v2422_v35  ;;  %3583 = vmatmul.mubr.msk.f32.vlgmr.msra.gmra.mrb[6].mxu1 %vm884_vm5, %v2588_v38 }
 0x753   :  { %3914 = vmatpush1.bf16.msra.mxu0 %v4781_v15  ;;  %3930 = vmatpush1.bf16.msra.mxu1 %v4781_v15 }
 0x754   :  { %3916 = vmatprep.subr.bf16.mxu0 %v4785_v16  ;;  %3932 = vmatprep.subr.bf16.mxu1 %v4785_v16 }
 0x755   :  { %2564 = vmatprep.mubr.f32.mxu0 %v4294_v0  ;;  %2730 = vmatprep.mubr.f32.mxu1 %v4294_v0 }
 0x757   :  { %3918 = vmatpush1.bf16.msra.mxu0 %v4797_v19  ;;  %3934 = vmatpush1.bf16.msra.mxu1 %v4797_v19 }
 0x75a   :  { %3582 = vmatmul.mubr.msk.f32.vlgmr.msra.gmra.mrb[6].mxu0 %vm884_vm5, %v2420_v39  ;;  %3584 = vmatmul.mubr.msk.f32.vlgmr.msra.gmra.mrb[6].mxu1 %vm884_vm5, %v2586_v40 }
 0x7fd   :  { %v1570_v24 = vpop.f32.mrb[0].mxu0  ;;  %v1736_v46 = vpop.f32.mrb[0].mxu1 }
 0x7fe   :  { %v1575_v48 = vadd.f32 %v1570_v24, %v1379_v42  ;;  %v1741_v6 = vadd.f32 %v1736_v46, %v1379_v42  ;;  %v1572_v7 = vpop.f32.mrb[1].mxu0  ;;  %v1738_v8 = vpop.f32.mrb[1].mxu1 }
 0x7ff   :  { %v1576_v9 = vadd.f32 %v1572_v7, %v1383_v43  ;;  %v1742_v10 = vadd.f32 %v1738_v8, %v1383_v43 }
 0x801   :  { %v1579_v32 = vcombine.low %v1575_v48, %v1576_v9  ;;  %v1745_v53 = vcombine.low %v1741_v6, %v1742_v10 }
 0x803   :  { %v1586_v54 = vrot.slane %v1579_v32, %v4549_v36  ;;  %v1752_v55 = vrot.slane %v1745_v53, %v4549_v36 }
 0x805   :  { %1588 = vst.msk [vmem:[#allocation2] sm:$0xf] %vm4551_vm3, %v1586_v54  ;;  %1754 = vst.msk [vmem:[#allocation2 + $0x4] sm:$0xf] %vm4551_vm3, %v1752_v55 }
 0x80d   :  { %v1902_v22 = vpop.f32.mrb[2].mxu0  ;;  %v2068_v23 = vpop.f32.mrb[2].mxu1 }
 0x80e   :  { %v1907_v27 = vadd.f32 %v1902_v22, %v1379_v42  ;;  %v2073_v56 = vadd.f32 %v2068_v23, %v1379_v42  ;;  %v1904_v57 = vpop.f32.mrb[3].mxu0  ;;  %v2070_v58 = vpop.f32.mrb[3].mxu1 }
 0x80f   :  { %v1908_v59 = vadd.f32 %v1904_v57, %v1383_v43  ;;  %v2074_v60 = vadd.f32 %v2070_v58, %v1383_v43 }
 0x811   :  { %v1911_v61 = vcombine.low %v1907_v27, %v1908_v59  ;;  %v2077_v62 = vcombine.low %v2073_v56, %v2074_v60 }
 0x813   :  { %v1918_v63 = vrot.slane %v1911_v61, %v4549_v36  ;;  %v2084_v11 = vrot.slane %v2077_v62, %v4549_v36 }
 0x815   :  { %1920 = vst.msk [vmem:[#allocation2 + $0x8] sm:$0xf] %vm4551_vm3, %v1918_v63  ;;  %2086 = vst.msk [vmem:[#allocation2 + $0xc] sm:$0xf] %vm4551_vm3, %v2084_v11 }
 0x81d   :  { %v2234_v12 = vpop.f32.mrb[4].mxu0  ;;  %v2400_v13 = vpop.f32.mrb[4].mxu1 }
 0x81e   :  { %v2239_v14 = vadd.f32 %v2234_v12, %v1379_v42  ;;  %v2405_v15 = vadd.f32 %v2400_v13, %v1379_v42  ;;  %v2236_v16 = vpop.f32.mrb[5].mxu0  ;;  %v2402_v17 = vpop.f32.mrb[5].mxu1 }
 0x81f   :  { %v2240_v18 = vadd.f32 %v2236_v16, %v1383_v43  ;;  %v2406_v19 = vadd.f32 %v2402_v17, %v1383_v43 }
 0x821   :  { %v2243_v20 = vcombine.low %v2239_v14, %v2240_v18  ;;  %v2409_v21 = vcombine.low %v2405_v15, %v2406_v19 }
 0x823   :  { %v2250_v25 = vrot.slane %v2243_v20, %v4549_v36  ;;  %v2416_v26 = vrot.slane %v2409_v21, %v4549_v36 }
 0x825   :  { %2252 = vst.msk [vmem:[#allocation2 + $0x10] sm:$0xf] %vm4551_vm3, %v2250_v25  ;;  %2418 = vst.msk [vmem:[#allocation2 + $0x14] sm:$0xf] %vm4551_vm3, %v2416_v26 }
 0x82d   :  { %v2566_v29 = vpop.f32.mrb[6].mxu0  ;;  %v2732_v31 = vpop.f32.mrb[6].mxu1 }
 0x82e   :  { %v2571_v28 = vadd.f32 %v2566_v29, %v1379_v42  ;;  %v2737_v33 = vadd.f32 %v2732_v31, %v1379_v42  ;;  %v2568_v30 = vpop.f32.mrb[7].mxu0  ;;  %v2734_v34 = vpop.f32.mrb[7].mxu1 }
 0x82f   :  { %v2572_v35 = vadd.f32 %v2568_v30, %v1383_v43  ;;  %v2738_v38 = vadd.f32 %v2734_v34, %v1383_v43 }
 0x831   :  { %v2575_v39 = vcombine.low %v2571_v28, %v2572_v35  ;;  %v2741_v40 = vcombine.low %v2737_v33, %v2738_v38 }
 0x833   :  { %v2582_v41 = vrot.slane %v2575_v39, %v4549_v36  ;;  %v2748_v24 = vrot.slane %v2741_v40, %v4549_v36 }
 0x835   :  { %2584 = vst.msk [vmem:[#allocation2 + $0x18] sm:$0xf] %vm4551_vm3, %v2582_v41  ;;  %2750 = vst.msk [vmem:[#allocation2 + $0x1c] sm:$0xf] %vm4551_vm3, %v2748_v24 }
 0x836 LB: > { %v3936_v44 = vpack.c.bf16 %v4707_v51, %v4703_v50  ;;  %v4302_v42 = vmov 0.0|0.0   ;;  %v2776_v43 = vrot.slane %v4282_v37, %v4549_v36  ;;  %v3939_v46 = vpack.c.bf16 %v4711_v1, %v4709_v52  ;;  %s4305_s6 = smov 96   ;;  %s4306_s30 = smov 64   ;;  %s4286_s8 = sphi %s4916_s8, %s2756_s8   ;;  %v4282_v37 = vphi %v5084_v37, %v3218_v37   ;;  %v4278_v47 = vphi %v5085_v47, %v3264_v47  }
 0x837   : > { %3935 = vmatprep.subr.bf16.mxu0 %v4302_v42  ;;  %3941 = vmatprep.subr.bf16.mxu1 %v4302_v42  ;;  %vm4303_vm7 = vmmov 0   ;;  %v4304_v48 = vmov 0.0   ;;  %v3942_v7 = vpack.c.bf16 %v4715_v3, %v4713_v2  ;;  %v3945_v8 = vpack.c.bf16 %v4719_v5, %v4717_v4  ;;  %s3618_s16 = sshll.u32 %s4286_s8, 3  ;;  %s4307_s5 = smov 32  }
 0x838   : > { %3937 = vmatpush3.bf16.msra.mxu0 %v3936_v44  ;;  %3725 = vmatprep.mubr.msk.f32.mxu0 %vm4303_vm7, %v4304_v48  ;;  %s4949_s20 = scalar_lea.vmem [#allocation2], %s3618_s16  ;;  %s3585_s19 = sshll.u32 %s4286_s8, 1 }
 0x839   : > { %3938 = vmatprep.subr.bf16.mxu0 %v4302_v42  ;;  %3736 = vmatprep.mubr.msk.f32.mxu1 %vm4303_vm7, %v4304_v48  ;;  %s4960_s1 = ssub.s32 7, %s3585_s19  ;;  %s4991_s24 = ssub.s32 6, %s3585_s19 }
 0x83a   : > { %2777 = vrot.lane.b32.xlu0 %v2776_v43, %s4305_s6  ;;  %3943 = vmatpush3.bf16.msra.mxu1 %v3942_v7  ;;  %s3619_s29 = sshll.u32 %s4960_s1, 2  ;;  %s3588_s22 = sshll.u32 %s4960_s1, 1 }
 0x83b   : > { %3944 = vmatprep.subr.bf16.mxu1 %v4302_v42  ;;  %s2767_s18 = scalar_lea.vmem [#allocation2], %s3619_s29  ;;  %s3019_s23 = scalar_lea.vmem [#allocation4], %s3588_s22 }
 0x83c   : > { %3940 = vmatpush3.bf16.msra.mxu0 %v3939_v46  ;;  %v2764_v54 = vld [vmem:[%s4949_s20] sm:$0xf]  ;;  %s3621_s25 = sshll.u32 %s4991_s24, 2  ;;  %s3617_s9 = sshll.u32 %s4286_s8, 2 }
 0x83d   : > { %3947 = vmatprep.subr.bf16.mxu0 %v4302_v42  ;;  %v2768_v63 = vld [vmem:[%s2767_s18] sm:$0xf]  ;;  %s3029_s26 = scalar_lea.vmem [#allocation2], %s3621_s25  ;;  %s5002_s17 = scalar_lea.vmem [#allocation3], %s3617_s9 }
 0x83e   : > { %3946 = vmatpush3.bf16.msra.mxu1 %v3945_v8  ;;  %v2976_v30 = vrot.slane %v2768_v63, 2  ;;  %s3598_s27 = sshll.u32 %s4991_s24, 1  ;;  %s2756_s8 = sadd.s32 1, %s4286_s8  }
 0x83f   : > { %3953 = vmatprep.subr.bf16.mxu1 %v4302_v42  ;;  %s3280_s28 = scalar_lea.vmem [#allocation4], %s3598_s27  ;;  %p2753_p5 = scmp.ge.s32.totalorder %s2756_s8, 4  }
 0x840   :  { %v3286_v50 = vld [vmem:[%s5079_s13 + $0x10] sm:$0xff] (%p2753_p5)  ;;  %v3287_v51 = vld [vmem:[%s5079_s13 + $0x18] sm:$0xff] (%p2753_p5)  ;;  %vm4309_vm8 = vmmov (%p2753_p5), 0   ;;  %s4310_s29 = smov (%p2753_p5), [#allocation13]   ;;  %vm3446_vm9 = vcmask (%p2753_p5), 25600  }
 0x841   : > { %3737 = vmatmul.mubr.msk.f32.vlgmr.msra.gmra.mrb[0].mxu1 %vm884_vm5, %v4278_v47  ;;  %v3969_v1 = vpack.c.bf16 (%p2753_p5), %v3287_v51, %v3286_v50  ;;  %s3454_s18 = sshll.u32 (%p2753_p5), %s4310_s29, 4  ;;  %s3455_s18 = int_to_ptr.vmem [resolvable:$true] %s3454_s18 }
 0x842   : > { %3955 = vmatpush3.bf16.msra.mxu1 %v3942_v7  ;;  %3758 = vmatprep.mubr.msk.f32.mxu1 %vm4303_vm7, %v4304_v48  ;;  %s4210_s22 = scalar_lea.vmem (%p2753_p5), %s3455_s18, 32  ;;  %p4215_p7 = scmp.lt.s32.totalorder (%p2753_p5), %s3455_s18, %s3455_s18 }
 0x843   : > { %3956 = vmatprep.subr.bf16.mxu1 %v4302_v42  ;;  %p4211_p6 = scmp.ne.s32.totalorder (%p2753_p5), %s3455_s18, %s4210_s22  ;;  %p4216_p8 = scmp.lt.s32.totalorder (%p2753_p5), %s4210_s22, %s4210_s22 }
 0x845   :  { %p4217_p9 = por (%p2753_p5), %p4216_p8, %p4215_p7 }
 0x846   : > { %3958 = vmatpush3.bf16.msra.mxu1 %v3945_v8 }
 0x847   :  { %p4218_p10 = pnand (%p2753_p5), %p4217_p9, %p4211_p6 }
 0x8ac   : > { %v2778_v6 = vpop.permute.xlu0 %2777 }
 0x8ad   : > { %3726 = vmatmul.mubr.msk.f32.vlgmr.msra.gmra.mrb[0].mxu0 %vm884_vm5, %v2778_v6 }
 0x8ae   : > { %3949 = vmatpush3.bf16.msra.mxu0 %v3936_v44  ;;  %3747 = vmatprep.mubr.msk.f32.mxu0 %vm4303_vm7, %v4304_v48 }
 0x8af   : > { %3950 = vmatprep.subr.bf16.mxu0 %v4302_v42 }
 0x8b2   : > { %3952 = vmatpush3.bf16.msra.mxu0 %v3939_v46 }
 0x914   : > { %v2920_v23 = vpop.f32.mrb[0].mxu1 }
 0x915   : > { %v2921_v27 = vadd.f32 %v4701_v49, %v2920_v23  ;;  %v3738_v56 = vpop.f32.mrb[1].mxu1  ;;  %v3597_v23 = vld [vmem:[%s4949_s20 + $0x4] sm:$0xf] }
 0x917   : > { %v2964_v58 = vrot.slane %v2921_v27, %v4549_v36 }
 0x980   : > { %v2847_v9 = vpop.f32.mrb[0].mxu0 }
 0x981   : > { %v2848_v10 = vadd.f32 %v4696_v45, %v2847_v9  ;;  %v3727_v32 = vpop.f32.mrb[1].mxu0 }
 0x983   : > { %v2938_v53 = vrot.slane %v2848_v10, %v4549_v36  ;;  %v2924_v55 = vadd.f32 %v2848_v10, %v2764_v54 }
 0x985   : > { %2939 = vrot.lane.b32.xlu0 %v2938_v53, %s4306_s30  ;;  %v3592_v22 = vmul.f32 -1.442695, %v2924_v55 }
 0x987   : > { %4090 = vpow2.f32 %v3592_v22 }
 0x989   : > { %2965 = vrot.lane.b32.xlu0 %v2964_v58, %s4305_s6 }
 0x98d   : > { %2985 = vrot.lane.b32.xlu0 %v2964_v58, %s4307_s5 }
 0x991   : > { %v4091_v57 = vpop.eup %4090 }
 0x992   : > { %v2928_v59 = vadd.f32 1.0, %v4091_v57 }
 0x994   : > { %4092 = vrcp.f32 %v2928_v59 }
 0x99e   : > { %v4093_v60 = vpop.eup %4092 }
 0x99f   : > { %v2949_v25 = vsub.f32 1.0, %v4093_v60  ;;  %v2955_v29 = vmul.f32 %v4282_v37, %v4093_v60 }
 0x9f7   : > { %v2940_v61 = vpop.permute.xlu0 %2939 }
 0x9f8   : > { %v2942_v62 = vmul.f32 %v4093_v60, %v2940_v61 }
 0x9fa   : > { %2944 = vrot.lane.b32.xlu1 %v2942_v62, %s4306_s30  ;;  %v3030_v62 = vld [vmem:[%s3029_s26] sm:$0xf] }
 0x9fb   : > { %v2966_v11 = vpop.permute.xlu0 %2965 }
 0x9fc   : > { %v2968_v12 = vadd.f32 %v2966_v11, %v2768_v63  ;;  %v2978_v34 = vadd.f32 %v2976_v30, %v2966_v11 }
 0x9fe   : > { %v3593_v13 = vmul.f32 -1.442695, %v2968_v12  ;;  %v3594_v35 = vmul.f32 -1.442695, %v2978_v34 }
 0x9ff   : > { %v2986_v18 = vpop.permute.xlu0 %2985 }
 0xa00   : > { %4094 = vpow2.f32 %v3593_v13 }
 0xa0a   : > { %v4095_v14 = vpop.eup %4094 }
 0xa0b   : > { %v2972_v15 = vadd.f32 1.0, %v4095_v14 }
 0xa0d   : > { %4096 = vrcp.f32 %v2972_v15 }
 0xa17   : > { %v4097_v19 = vpop.eup %4096 }
 0xa18   : > { %v2988_v20 = vmul.f32 %v4097_v19, %v2986_v18 }
 0xa1a   : > { %2994 = vrot.lane.b32.xlu0 %v2988_v20, %s4307_s5 }
 0xa6c   : > { %v2945_v16 = vpop.permute.xlu1 %2944 }
 0xa6d   : > { %v2947_v17 = vadd.f32 %v2945_v16, %v2764_v54 }
 0xa6f   : > { %4098 = vtanh.f32 %v2947_v17 }
 0xa70   : > { %4100 = vpow2.f32 %v3594_v35 }
 0xa79   : > { %v4099_v21 = vpop.eup %4098 }
 0xa7a   : > { %2951 = vrot.lane.b32.xlu1 %v4099_v21, %s4305_s6  ;;  %v4101_v38 = vpop.eup %4100 }
 0xa7b   : > { %v2982_v39 = vadd.f32 1.0, %v4101_v38 }
 0xa7d   : > { %4102 = vrcp.f32 %v2982_v39 }
 0xa87   : > { %v4103_v42 = vpop.eup %4102 }
 0xa88   : > { %v2999_v43 = vsub.f32 1.0, %v4103_v42  ;;  %v3001_v46 = vmul.f32 %v4278_v47, %v4103_v42 }
 0xa8c   : > { %v2995_v41 = vpop.permute.xlu0 %2994 }
 0xaec   : > { %v2952_v26 = vpop.permute.xlu1 %2951 }
 0xaed   : > { %v2954_v31 = vmul.f32 %v2952_v26, %v2949_v25 }
 0xaef   : > { %v4966_v28 = vadd.f32 %v2955_v29, %v2954_v31  ;;  %v3238_v31 = vrot.slane %v3030_v62, 2 }
 0xaf1   : > { %v3038_v33 = vrot.slane %v4966_v28, %v4549_v36 }
 0xaf3   : > { %3039 = vrot.lane.b32.xlu1 %v3038_v33, %s4305_s6 }
 0xaf7   : > { %2989 = vrot.lane.b32.xlu1 %v2768_v63, %s4305_s6  ;;  %v3003_v63 = vadd.f32 %v4966_v28, %v4966_v28 }
 0xaf9   : > { %v3011_v11 = vrot.slane %v3003_v63, %v4549_v36 }
 0xb65   : > { %v3040_v40 = vpop.permute.xlu1 %3039 }
 0xb66   : > { %3748 = vmatmul.mubr.msk.f32.vlgmr.msra.gmra.mrb[2].mxu0 %vm884_vm5, %v3040_v40 }
 0xb67   :  { %3769 = vmatprep.mubr.msk.f32.mxu0 (%p2753_p5), %vm4309_vm8, %v4294_v0 }
 0xb69   : > { %v2990_v37 = vpop.permute.xlu1 %2989 }
 0xb6a   : > { %v2991_v24 = vrot.slane %v2990_v37, 2 }
 0xb6c   : > { %v2997_v44 = vadd.f32 %v2995_v41, %v2991_v24 }
 0xb6e   : > { %4104 = vtanh.f32 %v2997_v44 }
 0xb78   : > { %v4105_v48 = vpop.eup %4104 }
 0xb79   : > { %v3000_v6 = vmul.f32 %v4105_v48, %v2999_v43 }
 0xb7b   : > { %v4975_v7 = vadd.f32 %v3001_v46, %v3000_v6 }
 0xb7d   : > { %v3018_v8 = vadd.f32 %v4975_v7, %v4975_v7  ;;  %3759 = vmatmul.mubr.msk.f32.vlgmr.msra.gmra.mrb[2].mxu1 %vm884_vm5, %v4975_v7 }
 0xb7e   :  { %3780 = vmatprep.mubr.msk.f32.mxu1 (%p2753_p5), %vm4309_vm8, %v4294_v0  ;;  %v3610_v0 = vld [vmem:[%s5080_s14] ss:$0 sm:$0xff] (%p2753_p5) }
 0xb7f   : > { %3020 = vst.msk [vmem:[%s3019_s23] sm:$0x3] %vm1121_vm6, %v3018_v8 }
 0xc39   : > { %v3109_v9 = vpop.f32.mrb[2].mxu0 }
 0xc3a   : > { %v3110_v10 = vadd.f32 %v4696_v45, %v3109_v9  ;;  %v3749_v47 = vpop.f32.mrb[3].mxu0  ;;  %v3291_v45 = vld [vmem:[%s5079_s13 + $0x38] sm:$0xff] (%p2753_p5) }
 0xc3c   : > { %v3200_v32 = vrot.slane %v3110_v10, %v4549_v36  ;;  %v3186_v27 = vadd.f32 %v3597_v23, %v3110_v10 }
 0xc3e   : > { %3201 = vrot.lane.b32.xlu1 %v3200_v32, %s4306_s30  ;;  %v3602_v56 = vmul.f32 -1.442695, %v3186_v27  ;;  %v3289_v32 = vld [vmem:[%s5079_s13 + $0x28] sm:$0xff] (%p2753_p5) }
 0xc40   : > { %4106 = vpow2.f32 %v3602_v56 }
 0xc4a   : > { %v4107_v57 = vpop.eup %4106 }
 0xc4b   : > { %v3190_v58 = vadd.f32 1.0, %v4107_v57 }
 0xc4d   : > { %4108 = vrcp.f32 %v3190_v58 }
 0xc50   : > { %v3182_v53 = vpop.f32.mrb[2].mxu1 }
 0xc51   : > { %v3183_v54 = vadd.f32 %v4701_v49, %v3182_v53  ;;  %v3760_v55 = vpop.f32.mrb[3].mxu1  ;;  %v3284_v53 = vld [vmem:[%s5079_s13] sm:$0xff] (%p2753_p5) }
 0xc53   : > { %v3226_v22 = vrot.slane %v3183_v54, %v4549_v36  ;;  %v4308_v54 = vmov (%p2753_p5), 0.0|0.0  }
 0xc54   :  { %3959 = vmatprep.subr.bf16.mxu0 (%p2753_p5), %v4308_v54  ;;  %3965 = vmatprep.subr.bf16.mxu1 (%p2753_p5), %v4308_v54 }
 0xc55   : > { %3227 = vrot.lane.b32.xlu1 %v3226_v22, %s4305_s6 }
 0xc57   : > { %v4109_v59 = vpop.eup %4108 }
 0xc58   : > { %v3211_v35 = vsub.f32 1.0, %v4109_v59  ;;  %v3217_v37 = vmul.f32 %v4109_v59, %v4966_v28 }
 0xcb0   : > { %v3202_v60 = vpop.permute.xlu1 %3201 }
 0xcb1   : > { %v3204_v61 = vmul.f32 %v4109_v59, %v3202_v60 }
 0xcb3   : > { %3206 = vrot.lane.b32.xlu0 %v3204_v61, %s4306_s30 }
 0xcb7   : > { %3247 = vrot.lane.b32.xlu0 %v3226_v22, %s4307_s5  ;;  %v3285_v22 = vld [vmem:[%s5079_s13 + $0x8] sm:$0xff] (%p2753_p5) }
 0xcb8   :  { %v3966_v49 = vpack.c.bf16 (%p2753_p5), %v3285_v22, %v3284_v53 }
 0xcba   :  { %3967 = vmatpush3.bf16.msra.mxu1 (%p2753_p5), %v3966_v49 }
 0xcbb   : > { %3251 = vrot.lane.b32.xlu0 %v3030_v62, %s4305_s6  ;;  %3968 = vmatprep.subr.bf16.mxu1 (%p2753_p5), %v4308_v54 }
 0xcbe   :  { %3970 = vmatpush3.bf16.msra.mxu1 (%p2753_p5), %v3969_v1 }
 0xcbf   : > { %3012 = vrot.lane.b32.xlu0 %v3011_v11, %s4305_s6 }
 0xcc7   : > { %v3228_v12 = vpop.permute.xlu1 %3227 }
 0xcc8   : > { %v3230_v13 = vadd.f32 %v3228_v12, %v3030_v62  ;;  %v3240_v33 = vadd.f32 %v3238_v31, %v3228_v12 }
 0xcca   : > { %v3603_v14 = vmul.f32 -1.442695, %v3230_v13  ;;  %v3604_v30 = vmul.f32 -1.442695, %v3240_v33 }
 0xccc   : > { %4110 = vpow2.f32 %v3603_v14 }
 0xcd6   : > { %v4111_v15 = vpop.eup %4110 }
 0xcd7   : > { %v3234_v17 = vadd.f32 1.0, %v4111_v15 }
 0xd25   : > { %v3207_v16 = vpop.permute.xlu0 %3206 }
 0xd26   : > { %v3209_v18 = vadd.f32 %v3597_v23, %v3207_v16 }
 0xd28   : > { %4112 = vtanh.f32 %v3209_v18 }
 0xd29   : > { %v3248_v19 = vpop.permute.xlu0 %3247  ;;  %4114 = vrcp.f32 %v3234_v17 }
 0xd2a   : > { %4116 = vpow2.f32 %v3604_v30 }
 0xd2d   : > { %v3252_v20 = vpop.permute.xlu0 %3251 }
 0xd2e   : > { %v3253_v40 = vrot.slane %v3252_v20, 2 }
 0xd31   : > { %v3013_v21 = vpop.permute.xlu0 %3012 }
 0xd32   : > { %v4113_v25 = vpop.eup %4112  ;;  %3017 = vst.msk [vmem:[%s5002_s17] sm:$0x3] %vm1121_vm6, %v3013_v21 }
 0xd33   : > { %3213 = vrot.lane.b32.xlu1 %v4113_v25, %s4305_s6  ;;  %v4115_v26 = vpop.eup %4114 }
 0xd34   : > { %v3250_v29 = vmul.f32 %v4115_v26, %v3248_v19  ;;  %v4117_v34 = vpop.eup %4116 }
 0xd35   : > { %v3244_v39 = vadd.f32 1.0, %v4117_v34 }
 0xd37   : > { %3256 = vrot.lane.b32.xlu1 %v3250_v29, %s4307_s5  ;;  %4118 = vrcp.f32 %v3244_v39 }
 0xd41   : > { %v4119_v46 = vpop.eup %4118 }
 0xd42   : > { %v3261_v48 = vsub.f32 1.0, %v4119_v46  ;;  %v3263_v8 = vmul.f32 %v4119_v46, %v4975_v7  ;;  %v3288_v7 = vld [vmem:[%s5079_s13 + $0x20] sm:$0xff] (%p2753_p5) }
 0xd43   :  { %v3960_v55 = vpack.c.bf16 (%p2753_p5), %v3289_v32, %v3288_v7 }
 0xd45   :  { %3961 = vmatpush3.bf16.msra.mxu0 (%p2753_p5), %v3960_v55 }
 0xd46   :  { %3962 = vmatprep.subr.bf16.mxu0 (%p2753_p5), %v4308_v54 }
 0xda5   : > { %v3214_v38 = vpop.permute.xlu1 %3213 }
 0xda6   : > { %v3216_v41 = vmul.f32 %v3214_v38, %v3211_v35 }
 0xda8   : > { %v3218_v37 = vadd.f32 %v3217_v37, %v3216_v41  }
 0xda9   : > { %v3257_v24 = vpop.permute.xlu1 %3256 }
 0xdaa   : > { %v3265_v44 = vadd.f32 %v3218_v37, %v3218_v37  ;;  %v3259_v42 = vadd.f32 %v3257_v24, %v3253_v40 }
 0xdac   : > { %v3273_v43 = vrot.slane %v3265_v44, %v4549_v36  ;;  %4120 = vtanh.f32 %v3259_v42  ;;  %v3290_v36 = vld [vmem:[%s5079_s13 + $0x30] sm:$0xff] (%p2753_p5) }
 0xdad   :  { %v3963_v52 = vpack.c.bf16 (%p2753_p5), %v3291_v45, %v3290_v36 }
 0xdae   : > { %3274 = vrot.lane.b32.xlu1 %v3273_v43, %s4305_s6 }
 0xdaf   :  { %3964 = vmatpush3.bf16.msra.mxu0 (%p2753_p5), %v3963_v52 }
 0xdb6   : > { %v4121_v6 = vpop.eup %4120 }
 0xdb7   : > { %v3262_v9 = vmul.f32 %v4121_v6, %v3261_v48 }
 0xdb9   : > { %v3264_v47 = vadd.f32 %v3263_v8, %v3262_v9  }
 0xdbb   : > { %v3279_v28 = vadd.f32 %v3264_v47, %v3264_v47 }
 0xdbd   : > { %3281 = vst.msk [vmem:[%s3280_s28] sm:$0x3] %vm1121_vm6, %v3279_v28 }
 0xdc4   :  { %v3283_v2 = vld [vmem:[#allocation4 + $0xe] sm:$0x3] (%p2753_p5) }
 0xdc5   :  { %3770 = vmatmul.mubr.msk.f32.vlgmr.msra.gmra.mrb[0].mxu0 (%p2753_p5), %vm884_vm5, %v3283_v2 }
 0xe1b   :  { %2755 = sbr.rel (!%p2753_p5) target bundleno = 2102 (0x836), region = 165 }
 0xe20   : > { %v3275_v10 = vpop.permute.xlu1 %3274 }
 0xe21   : > { %3607 = vst.msk [vmem:[%s5002_s17 + $0x2] sm:$0x3] %vm1121_vm6, %v3275_v10 }
 0xe28   :  { %v3282_v3 = vld [vmem:[#allocation3 + $0xe] sm:$0x3] }
 0xe29   :  { %3781 = vmatmul.mubr.msk.f32.vlgmr.msra.gmra.mrb[0].mxu1 %vm884_vm5, %v3282_v3 }
 0xe98   :  { %v3361_v4 = vpop.f32.mrb[0].mxu0 }
 0xe99   :  { %v3771_v47 = vpop.f32.mrb[1].mxu0 }
 0xefc   :  { %v3434_v5 = vpop.f32.mrb[0].mxu1 }
 0xefd   :  { %v3435_v23 = vadd.f32 %v3434_v5, %v3361_v4  ;;  %v3782_v27 = vpop.f32.mrb[1].mxu1 }
 0xeff   :  { %v3445_v56 = vadd.f32 %v3610_v0, %v3435_v23 }
 0xf01   :  { %3447 = vst.msk [vmem:[#allocation13] sm:$0x3] %vm3446_vm9, %v3445_v56 }
 0xf02   :  { %4221 = shalt.err (!%p4218_p10)
}
 0xf03   :  { %s4222_s25 = scalar_lea.hbm %s5081_s15, 32 }
 0xf04   :  { %p4223_p11 = scmp.ne.s32.totalorder %s5081_s15, %s4222_s25  ;;  %p4226_p12 = scmp.lt.u32.totalorder %s4222_s25, %s5081_s15 }
 0xf06   :  { %p4228_p13 = pnand %p4226_p12, %p4223_p11 }
 0xf08   :  { %4231 = shalt.err (!%p4228_p13)
}
 0xf09   :  { %3457 = dma.vmem_to_hbm [thread:$0]  %s3455_s18, 32, %s5081_s15, [#allocation7]  }
 0xf0a   :  { %4262 = dma.done.wait [#allocation7], 32  }
 0xf0b   :  { %4263 = vsyncadd [#allocation7], 4294967264 }
 0xf0c   :  { %3461 = vsyncpa [#allocation6], 1 }
 0xf0d   :  { %3462 = vsyncpa [#allocation9], 1 }
 0xf0e   :  { %3463 = vsyncpa [#allocation12], 1 }
 0xf0f   :  { %3464 = vsyncpa [#allocation7], 1 }

</bundles_post_ra>
